<compile_context>
chip_gen: v5e
topology: v5e:2x2
jax: 0.10.0
libtpu: 0.0.40
codegen_flags: <defaults>
</compile_context>

<pallas_src>
import math
from functools import partial

import jax
import jax.numpy as jnp
from jax.experimental import pallas as pl
from jax.experimental.pallas import tpu as pltpu

LANE = 128


def _round_up(x, m):
    return ((x + m - 1) // m) * m


def _pick_strip_h(Ho_p, Wo_p, Cin_p):
    """Pick strip_h dividing Ho_p with M = strip_h*Wo_p ~ 256-512 and a bounded acc."""
    cands = [d for d in range(1, Ho_p + 1)
             if Ho_p % d == 0 and (d * Wo_p) % 8 == 0]
    if not cands:
        cands = [Ho_p]

    def badness(sh):
        m = sh * Wo_p
        acc_bytes = sh * Wo_p * Cin_p * 4
        pen = 0.0
        if m < 256:
            pen += (256 - m)                       # underfilled MXU M
        if m > 512:
            pen += (m - 512) / 8.0                 # oversized strip
        if acc_bytes > 256 * 1024:                 # spill-churn guard
            pen += (acc_bytes - 256 * 1024) / 1024.0
        return pen

    return min(cands, key=badness)


def _conv_mbv1_kernel(x_hbm, wdw_ref, bdw_ref, wpw_ref, bpw_ref, o_ref,
                      x_buf, copy_sem,
                      *, K, stride, strip_h, Wo_p, Cin_p,
                      rows_fetch, n_strips):
    # x_hbm:   (N, Hp, stride, Wp_s, Cin_p) f32   full input, left in HBM
    # wdw_ref: (K, K, Cin_p)                f32   depthwise weights * BN scale
    # bdw_ref: (1, Cin_p)                   f32   folded BN bias (depthwise)
    # wpw_ref: (Cin_p, Cout_p)              bf16  pointwise weights * BN scale
    # bpw_ref: (1, Cout_p)                  f32   folded BN bias (pointwise)
    # o_ref:   (1, strip_h*Wo_p, Cout_p)    f32   lane-dense output strip
    # x_buf:   (2, rows_fetch, stride, Wp_s, Cin_p) f32  double-buffered strip
    # copy_sem: DMA semaphores, shape (2,)
    n = pl.program_id(0)
    s = pl.program_id(1)
    slot = s % 2
    row_pitch = strip_h * stride

    def start_fetch(strip_idx, slot_idx):
        pltpu.make_async_copy(
            x_hbm.at[n, pl.ds(strip_idx * row_pitch, rows_fetch)],
            x_buf.at[slot_idx],
            copy_sem.at[slot_idx],
        ).start()

    # Prime at the first strip of every image (safe if the batch axis is
    # megacore-sharded: each core re-primes for the images it owns).
    @pl.when(s == 0)
    def _():
        start_fetch(0, 0)

    # Prefetch the next strip of the same image; overlaps this strip's compute.
    if n_strips > 1:
        @pl.when(s + 1 < n_strips)
        def _():
            start_fetch(s + 1, (s + 1) % 2)

    # Wait for this strip's halo'd input rows.
    pltpu.make_async_copy(
        x_hbm.at[n, pl.ds(s * row_pitch, rows_fetch)],
        x_buf.at[slot],
        copy_sem.at[slot],
    ).wait()

    # ---- depthwise KxK conv (groups == Cin), unrolled taps, f32 on the VPU ----
    w_all = wdw_ref[...]                                  # (K, K, Cin_p) hoisted
    acc = None
    for kh in range(K):
        base_h = stride * (kh // stride)
        ph = kh % stride
        for kw in range(K):
            plane = kw % stride                           # W-deinterleave plane
            base_w = kw // stride
            rows = x_buf[slot, pl.ds(base_h, strip_h * stride), plane,
                         pl.ds(base_w, Wo_p), :]          # unit-stride loads only
            if stride == 1:
                patch = rows
            else:
                # H decimation = split a free major dim + static index (no strided
                # loads on the sublane axis).
                patch = rows.reshape(strip_h, stride, Wo_p, Cin_p)[:, ph]
            term = patch * w_all[kh, kw]
            acc = term if acc is None else acc + term     # first tap inits acc

    # ---- folded BN bias + ReLU6 (f32) ----
    y = jnp.clip(acc + bdw_ref[0], 0.0, 6.0)

    # ---- pointwise 1x1 conv == bf16 MXU matmul with f32 accumulation ----
    # (strip_h, Wo_p, Cin_p) -> (strip_h*Wo_p, Cin_p): Wo_p % 8 == 0 so the
    # collapse is layout-preserving.
    y_bf16 = y.reshape(strip_h * Wo_p, Cin_p).astype(jnp.bfloat16)
    z = jnp.dot(y_bf16, wpw_ref[...], preferred_element_type=jnp.float32)

    # ---- folded BN bias + ReLU6; lane-dense store (Cout_p is a 128-multiple) ----
    o_ref[0] = jnp.clip(z + bpw_ref[0], 0.0, 6.0)


def conv_mobilenetv1(x_nchw, params, *, kernel, stride, pad):
    """Forward pass of ConvMobilenetv1 (BN in eval mode). x_nchw: (N, Cin, H, W) f32."""
    (w_dw, g_dw, b_dw, m_dw, v_dw,
     w_pw, g_pw, b_pw, m_pw, v_pw) = params
    eps = 1e-5

    N, Cin, H, W = x_nchw.shape
    Cout = w_pw.shape[0]
    K = kernel
    Ho = (H + 2 * pad - K) // stride + 1
    Wo = (W + 2 * pad - K) // stride + 1

    # Pad output extents to sublane multiples (trimmed after the kernel).
    Ho_p = _round_up(Ho, 8)
    Wo_p = _round_up(Wo, 8)
    Cin_p = _round_up(Cin, LANE)
    Cout_p = _round_up(Cout, LANE)

    strip_h = _pick_strip_h(Ho_p, Wo_p, Cin_p)
    n_strips = Ho_p // strip_h
    # Halo'd rows fetched per strip (includes the extra rows the reshape-decimate
    # trick may touch when stride > 1).
    rows_fetch = strip_h * stride + stride * ((K - 1) // stride)

    # Padded input extents large enough for the padded output rows/cols.
    Hp = max(H + 2 * pad, Ho_p * stride + stride * ((K - 1) // stride))
    Wp = _round_up(max(W + 2 * pad, stride * (Wo_p + (K - 1) // stride)), stride)
    Wp_s = Wp // stride

    # --- host-side glue: layout, padding, W deinterleave, BN folding ------------
    # TODO(synk): in a full network the NCHW<->NHWC transposes and padding would
    # be hoisted out of the per-layer path.
    x_nhwc = jnp.transpose(x_nchw, (0, 2, 3, 1)).astype(jnp.float32)
    x_p = jnp.pad(x_nhwc, ((0, 0), (pad, Hp - H - pad), (pad, Wp - W - pad),
                           (0, Cin_p - Cin)))
    # Deinterleave W into `stride` planes so every in-kernel tap load is unit-stride.
    x_p = x_p.reshape(N, Hp, Wp_s, stride, Cin_p).transpose(0, 1, 3, 2, 4)

    inv_dw = g_dw / jnp.sqrt(v_dw + eps)                       # (Cin,)
    inv_pw = g_pw / jnp.sqrt(v_pw + eps)                       # (Cout,)

    # depthwise weight (Cin,1,K,K) -> (K,K,Cin), BN scale folded, channel-padded
    wdw = jnp.transpose(w_dw[:, 0], (1, 2, 0)) * inv_dw[None, None, :]
    wdw = jnp.pad(wdw, ((0, 0), (0, 0), (0, Cin_p - Cin))).astype(jnp.float32)
    bdw = jnp.pad(b_dw - m_dw * inv_dw, (0, Cin_p - Cin)).reshape(1, Cin_p)

    # pointwise weight (Cout,Cin,1,1) -> (Cin,Cout), BN scale folded, padded, bf16
    wpw = jnp.transpose(w_pw[:, :, 0, 0], (1, 0)) * inv_pw[None, :]
    wpw = jnp.pad(wpw, ((0, Cin_p - Cin), (0, Cout_p - Cout))).astype(jnp.bfloat16)
    bpw = jnp.pad(b_pw - m_pw * inv_pw, (0, Cout_p - Cout)).reshape(1, Cout_p)

    kern = partial(_conv_mbv1_kernel, K=K, stride=stride, strip_h=strip_h,
                   Wo_p=Wo_p, Cin_p=Cin_p, rows_fetch=rows_fetch,
                   n_strips=n_strips)

    # VMEM budget derived from the actual buffers (with headroom), so the tiling
    # scales to v7x's 64 MiB physical / v5e's 16 MiB default scoped VMEM.
    in_buf_bytes = 2 * rows_fetch * stride * Wp_s * Cin_p * 4
    w_bytes = 2 * (K * K * Cin_p * 4 + Cin_p * 4 + Cin_p * Cout_p * 2 + Cout_p * 4)
    out_buf_bytes = 2 * strip_h * Wo_p * Cout_p * 4
    work_bytes = 6 * strip_h * Wo_p * Cin_p * 4          # dw acc / patch spill room
    vmem_limit = int(min(96 * 1024 * 1024,
                         max(32 * 1024 * 1024,
                             2 * (in_buf_bytes + w_bytes + out_buf_bytes
                                  + work_bytes))))

    # Cost estimate from real (unpadded) channel counts.
    flops = 2 * N * Ho * Wo * Cin * K * K + 2 * N * Ho * Wo * Cin * Cout
    bytes_accessed = (N * H * W * Cin * 4 + Cin * K * K * 4 + Cin * Cout * 2
                      + Cin * 4 + Cout * 4 + N * Ho * Wo * Cout * 4)

    out = pl.pallas_call(
        kern,
        out_shape=jax.ShapeDtypeStruct((N, Ho_p * Wo_p, Cout_p), jnp.float32),
        grid_spec=pltpu.PrefetchScalarGridSpec(
            num_scalar_prefetch=0,
            grid=(N, n_strips),
            in_specs=[
                pl.BlockSpec(memory_space=pl.ANY),                 # x: manual DMA
                pl.BlockSpec((K, K, Cin_p),   lambda n, s: (0, 0, 0)),
                pl.BlockSpec((1, Cin_p),      lambda n, s: (0, 0)),
                pl.BlockSpec((Cin_p, Cout_p), lambda n, s: (0, 0)),
                pl.BlockSpec((1, Cout_p),     lambda n, s: (0, 0)),
            ],
            out_specs=pl.BlockSpec((1, strip_h * Wo_p, Cout_p),
                                   lambda n, s: (n, s, 0)),
            scratch_shapes=[
                pltpu.VMEM((2, rows_fetch, stride, Wp_s, Cin_p), jnp.float32),
                pltpu.SemaphoreType.DMA((2,)),
            ],
        ),
        compiler_params=pltpu.CompilerParams(
            dimension_semantics=("parallel", "arbitrary"),
            vmem_limit_bytes=vmem_limit),
        cost_estimate=pl.CostEstimate(flops=flops, transcendentals=0,
                                      bytes_accessed=bytes_accessed),
    )(x_p, wdw, bdw, wpw, bpw)

    out = out.reshape(N, Ho_p, Wo_p, Cout_p)[:, :Ho, :Wo, :Cout]
    return jnp.transpose(out, (0, 3, 1, 2))                       # back to NCHW


def _reference(x_nchw, params, *, kernel, stride, pad):
    """Pure-JAX f32 reference matching the PyTorch forward (BN in eval mode)."""
    (w_dw, g_dw, b_dw, m_dw, v_dw,
     w_pw, g_pw, b_pw, m_pw, v_pw) = params
    eps = 1e-5
    Cin = x_nchw.shape[1]
    dn = ('NCHW', 'OIHW', 'NCHW')

    y = jax.lax.conv_general_dilated(
        x_nchw, w_dw, window_strides=(stride, stride),
        padding=((pad, pad), (pad, pad)),
        dimension_numbers=dn, feature_group_count=Cin)
    y = (y - m_dw[None, :, None, None]) / jnp.sqrt(v_dw + eps)[None, :, None, None]
    y = y * g_dw[None, :, None, None] + b_dw[None, :, None, None]
    y = jnp.clip(y, 0.0, 6.0)

    z = jax.lax.conv_general_dilated(
        y, w_pw, window_strides=(1, 1), padding=((0, 0), (0, 0)),
        dimension_numbers=dn)
    z = (z - m_pw[None, :, None, None]) / jnp.sqrt(v_pw + eps)[None, :, None, None]
    z = z * g_pw[None, :, None, None] + b_pw[None, :, None, None]
    return jnp.clip(z, 0.0, 6.0)


def _init_params(key, in_chan, out_chan, kernel):
    k1, k2 = jax.random.split(key)
    fan_dw = 1 * kernel * kernel          # groups == in_chan -> 1 input chan / group
    bound_dw = math.sqrt(6.0 / fan_dw)
    w_dw = jax.random.uniform(k1, (in_chan, 1, kernel, kernel),
                              jnp.float32, -bound_dw, bound_dw)
    fan_pw = in_chan
    bound_pw = math.sqrt(6.0 / fan_pw)
    w_pw = jax.random.uniform(k2, (out_chan, in_chan, 1, 1),
                              jnp.float32, -bound_pw, bound_pw)
    g_dw = jnp.ones((in_chan,), jnp.float32)
    b_dw = jnp.zeros((in_chan,), jnp.float32)
    m_dw = jnp.zeros((in_chan,), jnp.float32)
    v_dw = jnp.ones((in_chan,), jnp.float32)
    g_pw = jnp.ones((out_chan,), jnp.float32)
    b_pw = jnp.zeros((out_chan,), jnp.float32)
    m_pw = jnp.zeros((out_chan,), jnp.float32)
    v_pw = jnp.ones((out_chan,), jnp.float32)
    return (w_dw, g_dw, b_dw, m_dw, v_dw, w_pw, g_pw, b_pw, m_pw, v_pw)


if __name__ == "__main__":
    key = jax.random.PRNGKey(0)
    configs = [
        # (N, Cin, Cout, H,  W,  kernel, stride, pad)
        (2, 8, 16, 16, 16, 3, 1, 1),   # stride-1 path, Ho/Wo already 8-aligned
        (2, 8, 16, 16, 16, 3, 2, 1),   # stride-2 path (W deinterleave + H decimate)
        (1, 8, 16, 14, 14, 3, 1, 1),   # Ho/Wo not multiples of 8 -> pad & trim path
    ]
    for (N, Cin, Cout, H, W, Kk, stride, pad) in configs:
        key, kx, kp = jax.random.split(key, 3)
        x = jax.random.normal(kx, (N, Cin, H, W), jnp.float32)
        params = _init_params(kp, Cin, Cout, Kk)

        out = conv_mobilenetv1(x, params, kernel=Kk, stride=stride, pad=pad)
        out = jax.block_until_ready(out)

        ref = _reference(x, params, kernel=Kk, stride=stride, pad=pad)
        assert out.shape == ref.shape, (out.shape, ref.shape)
        # Tolerance accounts for bf16 MXU inputs (pointwise weights + activations);
        # accumulation is f32, so error stays well below these bounds.
        assert jnp.allclose(out, ref, atol=5e-2, rtol=2e-2), (
            f"mismatch vs JAX reference for config "
            f"{(N, Cin, Cout, H, W, Kk, stride, pad)}")

    print("KERNEL_OK")
</pallas_src>

<mosaic_0001>
module attributes {stable_mosaic.version = 11 : i64} {
  func.func @_conv_mbv1_kernel(%arg0: i32, %arg1: i32, %arg2: memref<2x18x1x18x128xf32, #tpu.memory_space<any>>, %arg3: memref<3x3x128xf32, #tpu.memory_space<vmem>>, %arg4: memref<1x128xf32, #tpu.memory_space<vmem>>, %arg5: memref<128x128xbf16, #tpu.memory_space<vmem>>, %arg6: memref<1x128xf32, #tpu.memory_space<vmem>>, %arg7: memref<1x256x128xf32, #tpu.memory_space<vmem>>, %arg8: memref<2x18x1x18x128xf32, #tpu.memory_space<vmem>>, %arg9: memref<2x!tpu.dma_semaphore, #tpu.memory_space<semaphore_mem>>) attributes {dimension_semantics = [#tpu.dimension_semantics<parallel>, #tpu.dimension_semantics<arbitrary>], iteration_bounds = array<i64: 2, 1>, scalar_prefetch = 0 : i64, scratch_operands = 2 : i64, tpu.core_type = #tpu.core_type<tc>, window_params = [{}, {pipeline_mode = #tpu.pipeline_mode<synchronous>, transform_indices = @transform_1, window_bounds = array<i64: 3, 3, 128>}, {pipeline_mode = #tpu.pipeline_mode<synchronous>, transform_indices = @transform_2, window_bounds = array<i64: 1, 128>}, {pipeline_mode = #tpu.pipeline_mode<synchronous>, transform_indices = @transform_3, window_bounds = array<i64: 128, 128>}, {pipeline_mode = #tpu.pipeline_mode<synchronous>, transform_indices = @transform_4, window_bounds = array<i64: 1, 128>}, {transform_indices = @transform_5, window_bounds = array<i64: 1, 256, 128>}]} {
    %c2_i32 = arith.constant 2 : i32
    %c0_i32 = arith.constant 0 : i32
    %0 = arith.cmpi eq, %c2_i32, %c0_i32 : i32
    %c1_i32 = arith.constant 1 : i32
    %1 = arith.select %0, %c1_i32, %c2_i32 : i32
    %2 = arith.remsi %arg1, %1 : i32
    %c0_i32_0 = arith.constant 0 : i32
    %3 = arith.cmpi ne, %2, %c0_i32_0 : i32
    %c0_i32_1 = arith.constant 0 : i32
    %4 = arith.cmpi slt, %2, %c0_i32_1 : i32
    %c0_i32_2 = arith.constant 0 : i32
    %5 = arith.cmpi slt, %1, %c0_i32_2 : i32
    %6 = arith.xori %4, %5 : i1
    %7 = arith.andi %6, %3 : i1
    %8 = arith.addi %2, %1 : i32
    %9 = arith.select %7, %8, %2 : i32
    %c0_i32_3 = arith.constant 0 : i32
    %10 = arith.cmpi eq, %arg1, %c0_i32_3 : i32
    %11 = arith.extui %10 : i1 to i32
    %c0_i32_4 = arith.constant 0 : i32
    %12 = arith.cmpi ne, %11, %c0_i32_4 : i32
    scf.if %12 {
      %c0_i32_61 = arith.constant 0 : i32
      %c0_i32_62 = arith.constant 0 : i32
      %c0_i32_63 = arith.constant 0 : i32
      %c0_i32_64 = arith.constant 0 : i32
      %c0_i32_65 = arith.constant 0 : i32
      %c0_i32_66 = arith.constant 0 : i32
      %126 = tpu.memref_slice %arg2[%arg0, %c0_i32_63, %c0_i32_64, %c0_i32_65, %c0_i32_66] : memref<2x18x1x18x128xf32, #tpu.memory_space<any>> -> memref<1x18x1x18x128xf32, #tpu.memory_space<any>>
      %127 = tpu.memref_squeeze %126 : memref<1x18x1x18x128xf32, #tpu.memory_space<any>> -> memref<18x1x18x128xf32, #tpu.memory_space<any>>
      %c0_i32_67 = arith.constant 0 : i32
      %c0_i32_68 = arith.constant 0 : i32
      %c0_i32_69 = arith.constant 0 : i32
      %c0_i32_70 = arith.constant 0 : i32
      %128 = tpu.memref_slice %arg8[%c0_i32_61, %c0_i32_67, %c0_i32_68, %c0_i32_69, %c0_i32_70] : memref<2x18x1x18x128xf32, #tpu.memory_space<vmem>> -> memref<1x18x1x18x128xf32, #tpu.memory_space<vmem>>
      %129 = tpu.memref_squeeze %128 : memref<1x18x1x18x128xf32, #tpu.memory_space<vmem>> -> memref<18x1x18x128xf32, #tpu.memory_space<vmem>>
      %130 = tpu.memref_slice %arg9[%c0_i32_62] : memref<2x!tpu.dma_semaphore, #tpu.memory_space<semaphore_mem>> -> memref<1x!tpu.dma_semaphore, #tpu.memory_space<semaphore_mem>>
      %131 = tpu.memref_squeeze %130 : memref<1x!tpu.dma_semaphore, #tpu.memory_space<semaphore_mem>> -> memref<!tpu.dma_semaphore, #tpu.memory_space<semaphore_mem>>
      tpu.enqueue_dma source(%127 : memref<18x1x18x128xf32, #tpu.memory_space<any>>) target(%129 : memref<18x1x18x128xf32, #tpu.memory_space<vmem>>) target_semaphore(%131 : memref<!tpu.dma_semaphore, #tpu.memory_space<semaphore_mem>>)
    } else {
    }
    %c16_i32 = arith.constant 16 : i32
    %13 = arith.muli %arg1, %c16_i32 : i32
    %c0_i32_5 = arith.constant 0 : i32
    %c0_i32_6 = arith.constant 0 : i32
    %c0_i32_7 = arith.constant 0 : i32
    %14 = tpu.memref_slice %arg2[%arg0, %13, %c0_i32_5, %c0_i32_6, %c0_i32_7] : memref<2x18x1x18x128xf32, #tpu.memory_space<any>> -> memref<1x18x1x18x128xf32, #tpu.memory_space<any>>
    %15 = tpu.memref_squeeze %14 : memref<1x18x1x18x128xf32, #tpu.memory_space<any>> -> memref<18x1x18x128xf32, #tpu.memory_space<any>>
    %c0_i32_8 = arith.constant 0 : i32
    %c0_i32_9 = arith.constant 0 : i32
    %c0_i32_10 = arith.constant 0 : i32
    %c0_i32_11 = arith.constant 0 : i32
    %16 = tpu.memref_slice %arg8[%9, %c0_i32_8, %c0_i32_9, %c0_i32_10, %c0_i32_11] : memref<2x18x1x18x128xf32, #tpu.memory_space<vmem>> -> memref<1x18x1x18x128xf32, #tpu.memory_space<vmem>>
    %17 = tpu.memref_squeeze %16 : memref<1x18x1x18x128xf32, #tpu.memory_space<vmem>> -> memref<18x1x18x128xf32, #tpu.memory_space<vmem>>
    %18 = tpu.memref_slice %arg9[%9] : memref<2x!tpu.dma_semaphore, #tpu.memory_space<semaphore_mem>> -> memref<1x!tpu.dma_semaphore, #tpu.memory_space<semaphore_mem>>
    %19 = tpu.memref_squeeze %18 : memref<1x!tpu.dma_semaphore, #tpu.memory_space<semaphore_mem>> -> memref<!tpu.dma_semaphore, #tpu.memory_space<semaphore_mem>>
    tpu.wait_dma2 semaphore(%19 : memref<!tpu.dma_semaphore, #tpu.memory_space<semaphore_mem>>) src(%15 : memref<18x1x18x128xf32, #tpu.memory_space<any>>) dst(%17 : memref<18x1x18x128xf32, #tpu.memory_space<vmem>>)
    %c0 = arith.constant 0 : index
    %c0_12 = arith.constant 0 : index
    %c0_13 = arith.constant 0 : index
    %20 = vector.load %arg3[%c0, %c0_12, %c0_13] : memref<3x3x128xf32, #tpu.memory_space<vmem>>, vector<3x3x128xf32>
    %21 = arith.index_cast %9 : i32 to index
    %c0_14 = arith.constant 0 : index
    %c0_15 = arith.constant 0 : index
    %c0_16 = arith.constant 0 : index
    %c0_17 = arith.constant 0 : index
    %22 = vector.load %arg8[%21, %c0_14, %c0_15, %c0_16, %c0_17] : memref<2x18x1x18x128xf32, #tpu.memory_space<vmem>>, vector<1x16x1x16x128xf32>
    %23 = vector.shape_cast %22 : vector<1x16x1x16x128xf32> to vector<16x16x128xf32>
    %24 = vector.extract_strided_slice %20 {offsets = [0, 0, 0], sizes = [1, 1, 128], strides = [1, 1, 1]} : vector<3x3x128xf32> to vector<1x1x128xf32>
    %25 = vector.shape_cast %24 : vector<1x1x128xf32> to vector<128xf32>
    %26 = vector.shape_cast %25 : vector<128xf32> to vector<1x1x128xf32>
    %27 = vector.broadcast %26 : vector<1x1x128xf32> to vector<16x16x128xf32>
    %28 = arith.mulf %23, %27 : vector<16x16x128xf32>
    %29 = arith.index_cast %9 : i32 to index
    %c0_18 = arith.constant 0 : index
    %c0_19 = arith.constant 0 : index
    %c1 = arith.constant 1 : index
    %c0_20 = arith.constant 0 : index
    %30 = vector.load %arg8[%29, %c0_18, %c0_19, %c1, %c0_20] : memref<2x18x1x18x128xf32, #tpu.memory_space<vmem>>, vector<1x16x1x16x128xf32>
    %31 = vector.shape_cast %30 : vector<1x16x1x16x128xf32> to vector<16x16x128xf32>
    %32 = vector.extract_strided_slice %20 {offsets = [0, 1, 0], sizes = [1, 1, 128], strides = [1, 1, 1]} : vector<3x3x128xf32> to vector<1x1x128xf32>
    %33 = vector.shape_cast %32 : vector<1x1x128xf32> to vector<128xf32>
    %34 = vector.shape_cast %33 : vector<128xf32> to vector<1x1x128xf32>
    %35 = vector.broadcast %34 : vector<1x1x128xf32> to vector<16x16x128xf32>
    %36 = arith.mulf %31, %35 : vector<16x16x128xf32>
    %37 = arith.addf %28, %36 : vector<16x16x128xf32>
    %38 = arith.index_cast %9 : i32 to index
    %c0_21 = arith.constant 0 : index
    %c0_22 = arith.constant 0 : index
    %c2 = arith.constant 2 : index
    %c0_23 = arith.constant 0 : index
    %39 = vector.load %arg8[%38, %c0_21, %c0_22, %c2, %c0_23] : memref<2x18x1x18x128xf32, #tpu.memory_space<vmem>>, vector<1x16x1x16x128xf32>
    %40 = vector.shape_cast %39 : vector<1x16x1x16x128xf32> to vector<16x16x128xf32>
    %41 = vector.extract_strided_slice %20 {offsets = [0, 2, 0], sizes = [1, 1, 128], strides = [1, 1, 1]} : vector<3x3x128xf32> to vector<1x1x128xf32>
    %42 = vector.shape_cast %41 : vector<1x1x128xf32> to vector<128xf32>
    %43 = vector.shape_cast %42 : vector<128xf32> to vector<1x1x128xf32>
    %44 = vector.broadcast %43 : vector<1x1x128xf32> to vector<16x16x128xf32>
    %45 = arith.mulf %40, %44 : vector<16x16x128xf32>
    %46 = arith.addf %37, %45 : vector<16x16x128xf32>
    %47 = arith.index_cast %9 : i32 to index
    %c1_24 = arith.constant 1 : index
    %c0_25 = arith.constant 0 : index
    %c0_26 = arith.constant 0 : index
    %c0_27 = arith.constant 0 : index
    %48 = vector.load %arg8[%47, %c1_24, %c0_25, %c0_26, %c0_27] : memref<2x18x1x18x128xf32, #tpu.memory_space<vmem>>, vector<1x16x1x16x128xf32>
    %49 = vector.shape_cast %48 : vector<1x16x1x16x128xf32> to vector<16x16x128xf32>
    %50 = vector.extract_strided_slice %20 {offsets = [1, 0, 0], sizes = [1, 1, 128], strides = [1, 1, 1]} : vector<3x3x128xf32> to vector<1x1x128xf32>
    %51 = vector.shape_cast %50 : vector<1x1x128xf32> to vector<128xf32>
    %52 = vector.shape_cast %51 : vector<128xf32> to vector<1x1x128xf32>
    %53 = vector.broadcast %52 : vector<1x1x128xf32> to vector<16x16x128xf32>
    %54 = arith.mulf %49, %53 : vector<16x16x128xf32>
    %55 = arith.addf %46, %54 : vector<16x16x128xf32>
    %56 = arith.index_cast %9 : i32 to index
    %c1_28 = arith.constant 1 : index
    %c0_29 = arith.constant 0 : index
    %c1_30 = arith.constant 1 : index
    %c0_31 = arith.constant 0 : index
    %57 = vector.load %arg8[%56, %c1_28, %c0_29, %c1_30, %c0_31] : memref<2x18x1x18x128xf32, #tpu.memory_space<vmem>>, vector<1x16x1x16x128xf32>
    %58 = vector.shape_cast %57 : vector<1x16x1x16x128xf32> to vector<16x16x128xf32>
    %59 = vector.extract_strided_slice %20 {offsets = [1, 1, 0], sizes = [1, 1, 128], strides = [1, 1, 1]} : vector<3x3x128xf32> to vector<1x1x128xf32>
    %60 = vector.shape_cast %59 : vector<1x1x128xf32> to vector<128xf32>
    %61 = vector.shape_cast %60 : vector<128xf32> to vector<1x1x128xf32>
    %62 = vector.broadcast %61 : vector<1x1x128xf32> to vector<16x16x128xf32>
    %63 = arith.mulf %58, %62 : vector<16x16x128xf32>
    %64 = arith.addf %55, %63 : vector<16x16x128xf32>
    %65 = arith.index_cast %9 : i32 to index
    %c1_32 = arith.constant 1 : index
    %c0_33 = arith.constant 0 : index
    %c2_34 = arith.constant 2 : index
    %c0_35 = arith.constant 0 : index
    %66 = vector.load %arg8[%65, %c1_32, %c0_33, %c2_34, %c0_35] : memref<2x18x1x18x128xf32, #tpu.memory_space<vmem>>, vector<1x16x1x16x128xf32>
    %67 = vector.shape_cast %66 : vector<1x16x1x16x128xf32> to vector<16x16x128xf32>
    %68 = vector.extract_strided_slice %20 {offsets = [1, 2, 0], sizes = [1, 1, 128], strides = [1, 1, 1]} : vector<3x3x128xf32> to vector<1x1x128xf32>
    %69 = vector.shape_cast %68 : vector<1x1x128xf32> to vector<128xf32>
    %70 = vector.shape_cast %69 : vector<128xf32> to vector<1x1x128xf32>
    %71 = vector.broadcast %70 : vector<1x1x128xf32> to vector<16x16x128xf32>
    %72 = arith.mulf %67, %71 : vector<16x16x128xf32>
    %73 = arith.addf %64, %72 : vector<16x16x128xf32>
    %74 = arith.index_cast %9 : i32 to index
    %c2_36 = arith.constant 2 : index
    %c0_37 = arith.constant 0 : index
    %c0_38 = arith.constant 0 : index
    %c0_39 = arith.constant 0 : index
    %75 = vector.load %arg8[%74, %c2_36, %c0_37, %c0_38, %c0_39] : memref<2x18x1x18x128xf32, #tpu.memory_space<vmem>>, vector<1x16x1x16x128xf32>
    %76 = vector.shape_cast %75 : vector<1x16x1x16x128xf32> to vector<16x16x128xf32>
    %77 = vector.extract_strided_slice %20 {offsets = [2, 0, 0], sizes = [1, 1, 128], strides = [1, 1, 1]} : vector<3x3x128xf32> to vector<1x1x128xf32>
    %78 = vector.shape_cast %77 : vector<1x1x128xf32> to vector<128xf32>
    %79 = vector.shape_cast %78 : vector<128xf32> to vector<1x1x128xf32>
    %80 = vector.broadcast %79 : vector<1x1x128xf32> to vector<16x16x128xf32>
    %81 = arith.mulf %76, %80 : vector<16x16x128xf32>
    %82 = arith.addf %73, %81 : vector<16x16x128xf32>
    %83 = arith.index_cast %9 : i32 to index
    %c2_40 = arith.constant 2 : index
    %c0_41 = arith.constant 0 : index
    %c1_42 = arith.constant 1 : index
    %c0_43 = arith.constant 0 : index
    %84 = vector.load %arg8[%83, %c2_40, %c0_41, %c1_42, %c0_43] : memref<2x18x1x18x128xf32, #tpu.memory_space<vmem>>, vector<1x16x1x16x128xf32>
    %85 = vector.shape_cast %84 : vector<1x16x1x16x128xf32> to vector<16x16x128xf32>
    %86 = vector.extract_strided_slice %20 {offsets = [2, 1, 0], sizes = [1, 1, 128], strides = [1, 1, 1]} : vector<3x3x128xf32> to vector<1x1x128xf32>
    %87 = vector.shape_cast %86 : vector<1x1x128xf32> to vector<128xf32>
    %88 = vector.shape_cast %87 : vector<128xf32> to vector<1x1x128xf32>
    %89 = vector.broadcast %88 : vector<1x1x128xf32> to vector<16x16x128xf32>
    %90 = arith.mulf %85, %89 : vector<16x16x128xf32>
    %91 = arith.addf %82, %90 : vector<16x16x128xf32>
    %92 = arith.index_cast %9 : i32 to index
    %c2_44 = arith.constant 2 : index
    %c0_45 = arith.constant 0 : index
    %c2_46 = arith.constant 2 : index
    %c0_47 = arith.constant 0 : index
    %93 = vector.load %arg8[%92, %c2_44, %c0_45, %c2_46, %c0_47] : memref<2x18x1x18x128xf32, #tpu.memory_space<vmem>>, vector<1x16x1x16x128xf32>
    %94 = vector.shape_cast %93 : vector<1x16x1x16x128xf32> to vector<16x16x128xf32>
    %95 = vector.extract_strided_slice %20 {offsets = [2, 2, 0], sizes = [1, 1, 128], strides = [1, 1, 1]} : vector<3x3x128xf32> to vector<1x1x128xf32>
    %96 = vector.shape_cast %95 : vector<1x1x128xf32> to vector<128xf32>
    %97 = vector.shape_cast %96 : vector<128xf32> to vector<1x1x128xf32>
    %98 = vector.broadcast %97 : vector<1x1x128xf32> to vector<16x16x128xf32>
    %99 = arith.mulf %94, %98 : vector<16x16x128xf32>
    %100 = arith.addf %91, %99 : vector<16x16x128xf32>
    %c0_48 = arith.constant 0 : index
    %c0_49 = arith.constant 0 : index
    %101 = vector.load %arg4[%c0_48, %c0_49] : memref<1x128xf32, #tpu.memory_space<vmem>>, vector<1x128xf32>
    %102 = vector.shape_cast %101 : vector<1x128xf32> to vector<128xf32>
    %103 = vector.shape_cast %102 : vector<128xf32> to vector<1x1x128xf32>
    %104 = vector.broadcast %103 : vector<1x1x128xf32> to vector<16x16x128xf32>
    %105 = arith.addf %100, %104 : vector<16x16x128xf32>
    %cst = arith.constant 0.000000e+00 : f32
    %cst_50 = arith.constant 6.000000e+00 : f32
    %106 = vector.broadcast %cst : f32 to vector<16x16x128xf32>
    %107 = arith.maximumf %106, %105 : vector<16x16x128xf32>
    %108 = vector.broadcast %cst_50 : f32 to vector<16x16x128xf32>
    %109 = arith.minimumf %108, %107 : vector<16x16x128xf32>
    %110 = vector.shape_cast %109 : vector<16x16x128xf32> to vector<256x128xf32>
    %111 = arith.truncf %110 : vector<256x128xf32> to vector<256x128xbf16>
    %c0_51 = arith.constant 0 : index
    %c0_52 = arith.constant 0 : index
    %112 = vector.load %arg5[%c0_51, %c0_52] : memref<128x128xbf16, #tpu.memory_space<vmem>>, vector<128x128xbf16>
    %cst_53 = arith.constant dense<0.000000e+00> : vector<256x128xf32>
    %113 = tpu.matmul %111, %112, %cst_53 {dimension_numbers = #tpu.dot_dimension_numbers<[1], [0], [0], [1], [0, 0, 1, 1], [], []>} : vector<256x128xbf16>, vector<128x128xbf16>, vector<256x128xf32> -> vector<256x128xf32>
    %c0_54 = arith.constant 0 : index
    %c0_55 = arith.constant 0 : index
    %114 = vector.load %arg6[%c0_54, %c0_55] : memref<1x128xf32, #tpu.memory_space<vmem>>, vector<1x128xf32>
    %115 = vector.shape_cast %114 : vector<1x128xf32> to vector<128xf32>
    %116 = vector.shape_cast %115 : vector<128xf32> to vector<1x128xf32>
    %117 = vector.broadcast %116 : vector<1x128xf32> to vector<256x128xf32>
    %118 = arith.addf %113, %117 : vector<256x128xf32>
    %cst_56 = arith.constant 0.000000e+00 : f32
    %cst_57 = arith.constant 6.000000e+00 : f32
    %119 = vector.broadcast %cst_56 : f32 to vector<256x128xf32>
    %120 = arith.maximumf %119, %118 : vector<256x128xf32>
    %121 = vector.broadcast %cst_57 : f32 to vector<256x128xf32>
    %122 = arith.minimumf %121, %120 : vector<256x128xf32>
    %c0_58 = arith.constant 0 : index
    %c0_59 = arith.constant 0 : index
    %c0_60 = arith.constant 0 : index
    %123 = vector.load %arg7[%c0_58, %c0_59, %c0_60] : memref<1x256x128xf32, #tpu.memory_space<vmem>>, vector<1x256x128xf32>
    %124 = vector.shape_cast %123 : vector<1x256x128xf32> to vector<256x128xf32>
    %125 = vector.shape_cast %122 : vector<256x128xf32> to vector<1x256x128xf32>
    tpu.vector_store %arg7[%c0_58, %c0_59, %c0_60], %125 {strides = array<i32>} : memref<1x256x128xf32, #tpu.memory_space<vmem>>, vector<1x256x128xf32>,
    return
  }
  func.func @transform_1(%arg0: i32, %arg1: i32) -> (i32, i32, i32) {
    %c0_i32 = arith.constant 0 : i32
    %c0_i32_0 = arith.constant 0 : i32
    %c0_i32_1 = arith.constant 0 : i32
    %c0_i32_2 = arith.constant 0 : i32
    return %c0_i32, %c0_i32_0, %c0_i32_1 : i32, i32, i32
  }
  func.func @transform_2(%arg0: i32, %arg1: i32) -> (i32, i32) {
    %c0_i32 = arith.constant 0 : i32
    %c0_i32_0 = arith.constant 0 : i32
    %c0_i32_1 = arith.constant 0 : i32
    return %c0_i32, %c0_i32_0 : i32, i32
  }
  func.func @transform_3(%arg0: i32, %arg1: i32) -> (i32, i32) {
    %c0_i32 = arith.constant 0 : i32
    %c0_i32_0 = arith.constant 0 : i32
    %c0_i32_1 = arith.constant 0 : i32
    return %c0_i32, %c0_i32_0 : i32, i32
  }
  func.func @transform_4(%arg0: i32, %arg1: i32) -> (i32, i32) {
    %c0_i32 = arith.constant 0 : i32
    %c0_i32_0 = arith.constant 0 : i32
    %c0_i32_1 = arith.constant 0 : i32
    return %c0_i32, %c0_i32_0 : i32, i32
  }
  func.func @transform_5(%arg0: i32, %arg1: i32) -> (i32, i32, i32) {
    %c0_i32 = arith.constant 0 : i32
    %c0_i32_0 = arith.constant 0 : i32
    return %arg0, %arg1, %c0_i32 : i32, i32, i32
  }
}

</mosaic_0001>

<bundles_post_ra>
// kernel: tpu_custom_call.1
= control target key start
LH: loop header
LB: loop body
LE: loop exit
PB: predicated region body
PF: predicated region fallthrough
CT: control target
= control target key end

     0   :  { %10 = vsyncpa [#allocation5], 0  ;;  %s3194_s0 = inlined_call_operand.vmem [shape: f32[2,18,1,18,128], index: 0, kind: input, shape index: {}]   ;;  %s3195_s1 = inlined_call_operand.vmem [shape: f32[3,3,128], index: 1, kind: input, shape index: {}]   ;;  %s3196_s2 = inlined_call_operand.vmem [shape: f32[1,128], index: 2, kind: input, shape index: {}]   ;;  %s3197_s3 = inlined_call_operand.vmem [shape: bf16[128,128], index: 3, kind: input, shape index: {}]   ;;  %s3198_s4 = inlined_call_operand.vmem [shape: f32[1,128], index: 4, kind: input, shape index: {}]   ;;  %s3199_s5 = inlined_call_operand.hbm [shape: f32[2,256,128], index: 5, kind: output, shape index: {}]  }
   0x1   :  { %12 = vsyncpa [#allocation5 + $0x1], 0  ;;  %s2141_s18 = smov 0   ;;  %s2143_s19 = smov 0  }
   0x2   :  { %s2145_s20 = smov 0   ;;  %s2147_s21 = smov 0  }
   0x3   :  { %s2149_s22 = smov 0   ;;  %s2151_s23 = smov 0  }
   0x4 LB: > { %s1680_s24 = sadd.s32 4294967295, %s2107_s23   ;;  %s1681_s25 = sadd.s32 4294967294, %s2107_s23   ;;  %s2107_s23 = sphi %s2151_s23, %s18_s23   ;;  %s2103_s22 = sphi %s2149_s22, %s3394_s22   ;;  %s2099_s21 = sphi %s2147_s21, %s3393_s21   ;;  %s2095_s20 = sphi %s2145_s20, %s3392_s20   ;;  %s2091_s19 = sphi %s2143_s19, %s3391_s19   ;;  %s2087_s18 = sphi %s2141_s18, %s3390_s18  }
   0x5   : > { %s30_s26 = sadd.s32 1, %s2103_s22  ;;  %s123_s27 = sadd.s32 1, %s2095_s20 }
   0x6   : > { %p32_p0 = scmp.ge.s32.totalorder %s30_s26, 2  ;;  %p133_p1 = scmp.ne.s32.totalorder %s2095_s20, %s2091_s19 }
   0x7   : > { %p134_p2 = scmp.eq.s32.totalorder %s1680_s24, 1  ;;  %p139_p3 = scmp.ne.s32.totalorder %s2091_s19, %s2087_s18 }
   0x8   : > { %s3396_s26 = smov (%p32_p0, %s30_s26), 0  ;;  %p140_p5 = scmp.eq.s32.totalorder %s1681_s25, 1 }
   0x9   : > { %p2181_p4 = por %p134_p2, %p133_p1  ;;  %s118_s29 = ssub.s32 %s2103_s22, %s3396_s26 }
   0xa   : > { %p1683_p6 = scmp.ge.s32.totalorder %s2107_s23, 1  ;;  %p121_p7 = scmp.eq.s32.totalorder %s118_s29, 0 }
   0xb   : > { %p2188_p8 = por %p140_p5, %p139_p3  ;;  %p170_p9 = scmp.lt.s32.totalorder %s2107_s23, 3 }
   0xc   : > { %s2194_s6 = scalar_select %p121_p7, %s2095_s20, %s123_s27  }
   0xd   : > { %p171_p10 = pnand %p1683_p6, %p170_p9 }
   0xf   : > { %174 = sbr.rel (%p171_p10) target bundleno = 417 (0x1a1), region = 36 }
  0x14   : > { %s188_s7 = sand.u32 1, %s2091_s19   ;;  %s208_s8 = smul.u32 432, %s2099_s21 }
  0x15   : > { %s2200_s9 = sshll.u32 %s188_s7, 8 }
  0x16   : > { %s2205_s12 = scalar_lea.vmem %s3194_s0, %s208_s8  ;;  %s2262_s13 = scalar_lea.vmem [#allocation4], %s2200_s9 }
  0x17   : > { %v222_v0 = vld [vmem:[%s2205_s12] sm:$0xff]  ;;  %v224_v1 = vld [vmem:[%s2205_s12 + $0x8] sm:$0xff]  ;;  %v226_v2 = vld [vmem:[%s2205_s12 + $0x18] sm:$0xff] }
  0x18   : > { %223 = vst [vmem:[#allocation2] sm:$0xff] %v222_v0  ;;  %v228_v3 = vld [vmem:[%s2205_s12 + $0x20] sm:$0xff]  ;;  %v230_v4 = vld [vmem:[%s2205_s12 + $0x30] sm:$0xff]  ;;  %v232_v5 = vld [vmem:[%s2205_s12 + $0x38] sm:$0xff] }
  0x19   : > { %225 = vst [vmem:[#allocation2 + $0x8] sm:$0xff] %v224_v1  ;;  %v234_v6 = vld [vmem:[%s2205_s12 + $0x48] sm:$0xff]  ;;  %v236_v7 = vld [vmem:[%s2205_s12 + $0x50] sm:$0xff]  ;;  %v238_v8 = vld [vmem:[%s2205_s12 + $0x60] sm:$0xff] }
  0x1a   : > { %227 = vst [vmem:[#allocation2 + $0x18] sm:$0xff] %v226_v2  ;;  %v240_v9 = vld [vmem:[%s2205_s12 + $0x68] sm:$0xff]  ;;  %v242_v10 = vld [vmem:[%s2205_s12 + $0x78] sm:$0xff]  ;;  %v244_v11 = vld [vmem:[%s2205_s12 + $0x80] sm:$0xff] }
  0x1b   : > { %229 = vst [vmem:[#allocation2 + $0x20] sm:$0xff] %v228_v3  ;;  %v246_v12 = vld [vmem:[%s2205_s12 + $0x90] sm:$0xff]  ;;  %v248_v13 = vld [vmem:[%s2205_s12 + $0x98] sm:$0xff]  ;;  %v250_v14 = vld [vmem:[%s2205_s12 + $0xa8] sm:$0xff] }
  0x1c   : > { %231 = vst [vmem:[#allocation2 + $0x30] sm:$0xff] %v230_v4  ;;  %v252_v15 = vld [vmem:[%s2205_s12 + $0xb0] sm:$0xff]  ;;  %v254_v16 = vld [vmem:[%s2205_s12 + $0xc0] sm:$0xff]  ;;  %v256_v17 = vld [vmem:[%s2205_s12 + $0xc8] sm:$0xff] }
  0x1d   : > { %233 = vst [vmem:[#allocation2 + $0x38] sm:$0xff] %v232_v5  ;;  %v258_v18 = vld [vmem:[%s2205_s12 + $0xd8] sm:$0xff]  ;;  %v260_v19 = vld [vmem:[%s2205_s12 + $0xe0] sm:$0xff]  ;;  %v262_v20 = vld [vmem:[%s2205_s12 + $0xf0] sm:$0xff] }
  0x1e   : > { %235 = vst [vmem:[#allocation2 + $0x48] sm:$0xff] %v234_v6  ;;  %v264_v21 = vld [vmem:[%s2205_s12 + $0xf8] sm:$0xff]  ;;  %v266_v22 = vld [vmem:[%s2205_s12 + $0x108] sm:$0xff]  ;;  %v268_v23 = vld [vmem:[%s2205_s12 + $0x110] sm:$0xff] }
  0x1f   : > { %237 = vst [vmem:[#allocation2 + $0x50] sm:$0xff] %v236_v7  ;;  %v270_v24 = vld [vmem:[%s2205_s12 + $0x120] sm:$0xff]  ;;  %v272_v25 = vld [vmem:[%s2205_s12 + $0x128] sm:$0xff]  ;;  %v274_v26 = vld [vmem:[%s2205_s12 + $0x138] sm:$0xff] }
  0x20   : > { %239 = vst [vmem:[#allocation2 + $0x60] sm:$0xff] %v238_v8  ;;  %v276_v27 = vld [vmem:[%s2205_s12 + $0x140] sm:$0xff]  ;;  %v278_v28 = vld [vmem:[%s2205_s12 + $0x150] sm:$0xff]  ;;  %v280_v29 = vld [vmem:[%s2205_s12 + $0x158] sm:$0xff] }
  0x21   : > { %241 = vst [vmem:[#allocation2 + $0x68] sm:$0xff] %v240_v9  ;;  %v282_v30 = vld [vmem:[%s2205_s12 + $0x168] sm:$0xff]  ;;  %v284_v31 = vld [vmem:[%s2205_s12 + $0x170] sm:$0xff]  ;;  %v286_v32 = vld [vmem:[%s2205_s12 + $0x180] sm:$0xff] }
  0x22   : > { %243 = vst [vmem:[#allocation2 + $0x78] sm:$0xff] %v242_v10  ;;  %v288_v33 = vld [vmem:[%s2205_s12 + $0x188] sm:$0xff]  ;;  %v290_v34 = vld [vmem:[%s2205_s12 + $0x198] sm:$0xff]  ;;  %v292_v35 = vld [vmem:[%s2205_s12 + $0x1a0] sm:$0xff] }
  0x23   : > { %245 = vst [vmem:[#allocation2 + $0x80] sm:$0xff] %v244_v11  ;;  %v1685_v36 = vld [vmem:[%s2205_s12 + $0x10] sm:$0x3]  ;;  %v1686_v37 = vld [vmem:[%s2205_s12 + $0x28] sm:$0x3] }
  0x24   : > { %247 = vst [vmem:[#allocation2 + $0x90] sm:$0xff] %v246_v12  ;;  %v1687_v38 = vld [vmem:[%s2205_s12 + $0x40] sm:$0x3]  ;;  %v1688_v39 = vld [vmem:[%s2205_s12 + $0x58] sm:$0x3] }
  0x25   : > { %249 = vst [vmem:[#allocation2 + $0x98] sm:$0xff] %v248_v13  ;;  %v1689_v40 = vld [vmem:[%s2205_s12 + $0x70] sm:$0x3]  ;;  %v1690_v41 = vld [vmem:[%s2205_s12 + $0x88] sm:$0x3] }
  0x26   : > { %251 = vst [vmem:[#allocation2 + $0xa8] sm:$0xff] %v250_v14  ;;  %v1691_v42 = vld [vmem:[%s2205_s12 + $0xa0] sm:$0x3]  ;;  %v1692_v43 = vld [vmem:[%s2205_s12 + $0xb8] sm:$0x3] }
  0x27   : > { %253 = vst [vmem:[#allocation2 + $0xb0] sm:$0xff] %v252_v15  ;;  %v1693_v44 = vld [vmem:[%s2205_s12 + $0xd0] sm:$0x3]  ;;  %v1694_v45 = vld [vmem:[%s2205_s12 + $0xe8] sm:$0x3] }
  0x28   : > { %255 = vst [vmem:[#allocation2 + $0xc0] sm:$0xff] %v254_v16  ;;  %v1695_v46 = vld [vmem:[%s2205_s12 + $0x100] sm:$0x3]  ;;  %v1696_v47 = vld [vmem:[%s2205_s12 + $0x118] sm:$0x3] }
  0x29   : > { %257 = vst [vmem:[#allocation2 + $0xc8] sm:$0xff] %v256_v17  ;;  %v1697_v48 = vld [vmem:[%s2205_s12 + $0x130] sm:$0x3]  ;;  %v1698_v49 = vld [vmem:[%s2205_s12 + $0x148] sm:$0x3] }
  0x2a   : > { %259 = vst [vmem:[#allocation2 + $0xd8] sm:$0xff] %v258_v18  ;;  %v1699_v50 = vld [vmem:[%s2205_s12 + $0x160] sm:$0x3]  ;;  %v1700_v51 = vld [vmem:[%s2205_s12 + $0x178] sm:$0x3] }
  0x2b   : > { %261 = vst [vmem:[#allocation2 + $0xe0] sm:$0xff] %v260_v19  ;;  %v1701_v52 = vld [vmem:[%s2205_s12 + $0x190] sm:$0x3]  ;;  %v1702_v53 = vld [vmem:[%s2205_s12 + $0x1a8] sm:$0x3] }
  0x2c   : > { %263 = vst [vmem:[#allocation2 + $0xf0] sm:$0xff] %v262_v20 }
  0x2d   : > { %265 = vst [vmem:[#allocation2 + $0xf8] sm:$0xff] %v264_v21 }
  0x2e   : > { %267 = vst [vmem:[#allocation2 + $0x108] sm:$0xff] %v266_v22 }
  0x2f   : > { %269 = vst [vmem:[#allocation2 + $0x110] sm:$0xff] %v268_v23 }
  0x30   : > { %271 = vst [vmem:[#allocation2 + $0x120] sm:$0xff] %v270_v24 }
  0x31   : > { %273 = vst [vmem:[#allocation2 + $0x128] sm:$0xff] %v272_v25 }
  0x32   : > { %275 = vst [vmem:[#allocation2 + $0x138] sm:$0xff] %v274_v26 }
  0x33   : > { %277 = vst [vmem:[#allocation2 + $0x140] sm:$0xff] %v276_v27 }
  0x34   : > { %279 = vst [vmem:[#allocation2 + $0x150] sm:$0xff] %v278_v28 }
  0x35   : > { %281 = vst [vmem:[#allocation2 + $0x158] sm:$0xff] %v280_v29 }
  0x36   : > { %283 = vst [vmem:[#allocation2 + $0x168] sm:$0xff] %v282_v30 }
  0x37   : > { %285 = vst [vmem:[#allocation2 + $0x170] sm:$0xff] %v284_v31 }
  0x38   : > { %287 = vst [vmem:[#allocation2 + $0x180] sm:$0xff] %v286_v32 }
  0x39   : > { %289 = vst [vmem:[#allocation2 + $0x188] sm:$0xff] %v288_v33 }
  0x3a   : > { %291 = vst [vmem:[#allocation2 + $0x198] sm:$0xff] %v290_v34 }
  0x3b   : > { %293 = vst [vmem:[#allocation2 + $0x1a0] sm:$0xff] %v292_v35 }
  0x3c   : > { %305 = vst [vmem:[#allocation2 + $0x10] sm:$0x3] %v1685_v36 }
  0x3d   : > { %307 = vst [vmem:[#allocation2 + $0x28] sm:$0x3] %v1686_v37 }
  0x3e   : > { %309 = vst [vmem:[#allocation2 + $0x40] sm:$0x3] %v1687_v38 }
  0x3f   : > { %311 = vst [vmem:[#allocation2 + $0x58] sm:$0x3] %v1688_v39 }
  0x40   : > { %313 = vst [vmem:[#allocation2 + $0x70] sm:$0x3] %v1689_v40 }
  0x41   : > { %315 = vst [vmem:[#allocation2 + $0x88] sm:$0x3] %v1690_v41 }
  0x42   : > { %317 = vst [vmem:[#allocation2 + $0xa0] sm:$0x3] %v1691_v42 }
  0x43   : > { %319 = vst [vmem:[#allocation2 + $0xb8] sm:$0x3] %v1692_v43 }
  0x44   : > { %321 = vst [vmem:[#allocation2 + $0xd0] sm:$0x3] %v1693_v44 }
  0x45   : > { %323 = vst [vmem:[#allocation2 + $0xe8] sm:$0x3] %v1694_v45 }
  0x46   : > { %325 = vst [vmem:[#allocation2 + $0x100] sm:$0x3] %v1695_v46 }
  0x47   : > { %327 = vst [vmem:[#allocation2 + $0x118] sm:$0x3] %v1696_v47 }
  0x48   : > { %329 = vst [vmem:[#allocation2 + $0x130] sm:$0x3] %v1697_v48 }
  0x49   : > { %331 = vst [vmem:[#allocation2 + $0x148] sm:$0x3] %v1698_v49 }
  0x4a   : > { %333 = vst [vmem:[#allocation2 + $0x160] sm:$0x3] %v1699_v50 }
  0x4b   : > { %335 = vst [vmem:[#allocation2 + $0x178] sm:$0x3] %v1700_v51 }
  0x4c   : > { %337 = vst [vmem:[#allocation2 + $0x190] sm:$0x3] %v1701_v52 }
  0x4d   : > { %339 = vst [vmem:[#allocation2 + $0x1a8] sm:$0x3] %v1702_v53 }
  0x4e   : > { %343 = vsyncadd [#allocation3], 5184 }
  0x4f   : > { %2079 = dma.done.wait [#allocation3], 5184 }
  0x50   : > { %2080 = vsyncadd [#allocation3], 4294962112  ;;  %v1941_v54 = vld [vmem:[%s3197_s3 + $0x38] sm:$0xff]  ;;  %v1940_v55 = vld [vmem:[%s3197_s3 + $0x30] sm:$0xff]  ;;  %s1942_s16 = sshll.u32 %s2099_s21, 8  ;;  %s1584_s27 = sshll.u32 %s2262_s13, 4  ;;  %s1585_s27 = int_to_ptr.vmem [resolvable:$true] %s1584_s27 }
  0x51   : > { %1384 = vmatpush.bf16.msra.mxu0 %v1941_v54  ;;  %1943 = vmatpush.bf16.msra.mxu1 %v1941_v54  ;;  %v350_v56 = vld [vmem:[%s3195_s1] sm:$0x7]  ;;  %v351_v57 = vld [vmem:[%s3195_s1 + $0x4] sm:$0x7]  ;;  %v352_v58 = vld [vmem:[%s3195_s1 + $0x8] sm:$0x7]  ;;  %s1583_s25 = scalar_lea.hbm %s3199_s5, %s1942_s16 }
  0x52   : > { %1944 = vmatpush.bf16.msra.mxu2 %v1941_v54  ;;  %1945 = vmatpush.bf16.msra.mxu3 %v1941_v54  ;;  %v355_v59 = vld [vmem:[#allocation2] sm:$0xff]  ;;  %v2279_v60 = vperm.slane %v350_v56, 0  ;;  %v1939_v61 = vld [vmem:[%s3197_s3 + $0x28] sm:$0xff]  ;;  %v2284_v1 = vperm.slane %v350_v56, 1  ;;  %v2286_v2 = vperm.slane %v350_v56, 2  ;;  %v2288_v3 = vperm.slane %v351_v57, 0 }
  0x53   : > { %v356_v62 = vld [vmem:[#allocation2 + $0x8] sm:$0xff]  ;;  %v2292_v8 = vld [vmem:[#allocation2 + $0x18] sm:$0xff]  ;;  %v2294_v9 = vperm.slane %v351_v57, 1  ;;  %v2296_v10 = vperm.slane %v351_v57, 2  ;;  %v2301_v14 = vld [vmem:[#allocation2 + $0x20] sm:$0xff]  ;;  %v2307_v17 = vperm.slane %v352_v58, 0 }
  0x54   : > { %v420_v63 = vld [vmem:[#allocation2 + $0x1] sm:$0xff]  ;;  %v421_v0 = vld [vmem:[#allocation2 + $0x9] sm:$0xff]  ;;  %v388_v4 = vmul.f32 %v2279_v60, %v355_v59  ;;  %v389_v5 = vmul.f32 %v2279_v60, %v356_v62  ;;  %v2303_v15 = vld [vmem:[#allocation2 + $0x19] sm:$0xff]  ;;  %v649_v19 = vmul.f32 %v2292_v8, %v2288_v3  ;;  %v650_v20 = vmul.f32 %v2301_v14, %v2288_v3  ;;  %s1586_s29 = sshll.u32 %s1583_s25, 4  ;;  %s1570_s21 = scalar_lea.sflag [#allocation5], %s188_s7  ;;  %s1587_s29 = int_to_ptr.hbm [resolvable:$true] %s1586_s29 }
  0x55   : > { %v517_v6 = vld [vmem:[#allocation2 + $0x2] sm:$0xff]  ;;  %v518_v7 = vld [vmem:[#allocation2 + $0xa] sm:$0xff]  ;;  %1385 = vmatpush.bf16.msra.mxu0 %v1940_v55  ;;  %1946 = vmatpush.bf16.msra.mxu1 %v1940_v55  ;;  %v453_v11 = vmul.f32 %v2284_v1, %v420_v63  ;;  %v454_v12 = vmul.f32 %v2284_v1, %v421_v0  ;;  %v2314_v21 = vld [vmem:[#allocation2 + $0x1a] sm:$0xff]  ;;  %v2320_v24 = vperm.slane %v352_v58, 1  ;;  %v746_v27 = vmul.f32 %v2303_v15, %v2294_v9  ;;  %s2041_s8 = sshra.s32 %s1587_s29, 4  ;;  %s2047_s12 = scalar_lea.hbm %s3199_s5, 512  ;;  %s2042_s8 = int_to_ptr.hbm [resolvable:$true] %s2041_s8 }
  0x56   : > { %v550_v13 = vmul.f32 %v2286_v2, %v517_v6  ;;  %v2305_v16 = vld [vmem:[#allocation2 + $0x21] sm:$0xff]  ;;  %1947 = vmatpush.bf16.msra.mxu2 %v1940_v55  ;;  %1948 = vmatpush.bf16.msra.mxu3 %v1940_v55  ;;  %v551_v18 = vmul.f32 %v2286_v2, %v518_v7  ;;  %v2318_v23 = vld [vmem:[#allocation2 + $0x30] sm:$0xff]  ;;  %v2326_v29 = vld [vmem:[#allocation2 + $0x38] sm:$0xff]  ;;  %v843_v32 = vmul.f32 %v2314_v21, %v2296_v10  ;;  %v2351_v42 = vperm.slane %v352_v58, 2  ;;  %s2043_s9 = scalar_lea.hbm %s2042_s8, 256  ;;  %p2048_p0 = scmp.lt.s32.totalorder %s2042_s8, %s3199_s5 }
  0x57   : > { %v2316_v22 = vld [vmem:[#allocation2 + $0x22] sm:$0xff]  ;;  %v485_v25 = vadd.f32 %v453_v11, %v388_v4  ;;  %v486_v26 = vadd.f32 %v454_v12, %v389_v5  ;;  %v747_v28 = vmul.f32 %v2305_v16, %v2294_v9  ;;  %v2328_v30 = vld [vmem:[#allocation2 + $0x31] sm:$0xff]  ;;  %v2330_v31 = vld [vmem:[#allocation2 + $0x39] sm:$0xff]  ;;  %v942_v34 = vmul.f32 %v2318_v23, %v2307_v17  ;;  %p2044_p11 = scmp.ne.s32.totalorder %s2042_s8, %s2043_s9  ;;  %p2049_p1 = scmp.lt.s32.totalorder %s2047_s12, %s2043_s9 }
  0x58   : > { %v844_v33 = vmul.f32 %v2316_v22, %v2296_v10  ;;  %v943_v35 = vmul.f32 %v2326_v29, %v2307_v17  ;;  %v2340_v36 = vld [vmem:[#allocation2 + $0x32] sm:$0xff]  ;;  %v2342_v37 = vld [vmem:[#allocation2 + $0x3a] sm:$0xff]  ;;  %v2349_v41 = vmul.f32 %v2328_v30, %v2320_v24  ;;  %v2355_v44 = vld [vmem:[#allocation2 + $0x68] sm:$0xff]  ;;  %v1040_v45 = vmul.f32 %v2330_v31, %v2320_v24 }
  0x59   : > { %1386 = vmatpush.bf16.msra.mxu0 %v1939_v61  ;;  %1949 = vmatpush.bf16.msra.mxu1 %v1939_v61  ;;  %v1938_v38 = vld [vmem:[%s3197_s3 + $0x20] sm:$0xff]  ;;  %v582_v39 = vadd.f32 %v550_v13, %v485_v25  ;;  %v583_v40 = vadd.f32 %v551_v18, %v486_v26  ;;  %3280 = vst [vmem:[#allocation10_spill] sm:$0xff] %v2355_v44  ;;  %v2365_v49 = vld [vmem:[#allocation2 + $0x69] sm:$0xff]  ;;  %v2379_v56 = vld [vmem:[#allocation2 + $0x78] sm:$0xff]  ;;  %p2045_p12 = pnand %p2044_p11, %p2181_p4  ;;  %p2050_p2 = por %p2049_p1, %p2048_p0 }
  0x5a   : > { %v2353_v43 = vld [vmem:[#allocation2 + $0x60] sm:$0xff]  ;;  %1950 = vmatpush.bf16.msra.mxu2 %v1939_v61  ;;  %1951 = vmatpush.bf16.msra.mxu3 %v1939_v61  ;;  %v397_v47 = vmul.f32 %v2279_v60, %v2355_v44  ;;  %3282 = vst [vmem:[#allocation12_spill] sm:$0xff] %v2365_v49  ;;  %v2371_v53 = vmul.f32 %v2340_v36, %v2351_v42  ;;  %v2377_v55 = vld [vmem:[#allocation2 + $0x6a] sm:$0xff]  ;;  %v1937_v4 = vld [vmem:[%s3197_s3 + $0x18] sm:$0xff] }
  0x5b   : > { %3279 = vst [vmem:[#allocation9_spill] sm:$0xff] %v2353_v43  ;;  %v396_v46 = vmul.f32 %v2279_v60, %v2353_v43  ;;  %v2363_v48 = vld [vmem:[#allocation2 + $0x61] sm:$0xff]  ;;  %v681_v51 = vadd.f32 %v649_v19, %v582_v39  ;;  %v682_v52 = vadd.f32 %v650_v20, %v583_v40  ;;  %v2375_v54 = vmul.f32 %v2342_v37, %v2351_v42  ;;  %v2391_v63 = vld [vmem:[#allocation2 + $0x79] sm:$0xff]  ;;  %v2406_v20 = vld [vmem:[#allocation2 + $0x90] sm:$0xff]  ;;  %p2046_p13 = pneg %p2045_p12 }
  0x5c   : > { %3281 = vst [vmem:[#allocation11_spill] sm:$0xff] %v2363_v48  ;;  %v2367_v50 = vld [vmem:[#allocation2 + $0x62] sm:$0xff]  ;;  %v461_v58 = vmul.f32 %v2284_v1, %v2363_v48  ;;  %v462_v59 = vmul.f32 %v2284_v1, %v2365_v49  ;;  %v559_v62 = vmul.f32 %v2286_v2, %v2377_v55  ;;  %v657_v7 = vmul.f32 %v2379_v56, %v2288_v3  ;;  %v2400_v11 = vld [vmem:[#allocation2 + $0x7a] sm:$0xff] }
  0x5d   : > { %3283 = vst [vmem:[#allocation13_spill] sm:$0xff] %v2367_v50  ;;  %v2381_v57 = vld [vmem:[#allocation2 + $0x80] sm:$0xff]  ;;  %v558_v61 = vmul.f32 %v2286_v2, %v2367_v50  ;;  %1387 = vmatpush.bf16.msra.mxu0 %v1938_v38  ;;  %1952 = vmatpush.bf16.msra.mxu1 %v1938_v38  ;;  %v778_v5 = vadd.f32 %v746_v27, %v681_v51  ;;  %v2412_v39 = vld [vmem:[#allocation2 + $0x98] sm:$0xff]  ;;  %p2051_p3 = pnand %p2050_p2, %p2046_p13 }
  0x5e   : > { %3284 = vst [vmem:[#allocation14_spill] sm:$0xff] %v2377_v55  ;;  %v2393_v0 = vld [vmem:[#allocation2 + $0x81] sm:$0xff]  ;;  %v779_v6 = vadd.f32 %v747_v28, %v682_v52  ;;  %1953 = vmatpush.bf16.msra.mxu2 %v1938_v38  ;;  %1954 = vmatpush.bf16.msra.mxu3 %v1938_v38  ;;  %v493_v13 = vadd.f32 %v461_v58, %v396_v46 }
  0x5f   : > { %v2402_v12 = vld [vmem:[#allocation2 + $0x82] sm:$0xff]  ;;  %v494_v18 = vadd.f32 %v462_v59, %v397_v47  ;;  %v658_v19 = vmul.f32 %v2381_v57, %v2288_v3  ;;  %v875_v25 = vadd.f32 %v843_v32, %v778_v5  ;;  %v754_v27 = vmul.f32 %v2391_v63, %v2294_v9  ;;  %v2418_v47 = vld [vmem:[#allocation2 + $0x91] sm:$0xff]  ;;  %v2420_v32 = vld [vmem:[#allocation2 + $0x99] sm:$0xff] }
  0x60   : > { %v876_v26 = vadd.f32 %v844_v33, %v779_v6  ;;  %v755_v28 = vmul.f32 %v2393_v0, %v2294_v9  ;;  %v590_v40 = vadd.f32 %v558_v61, %v493_v13  ;;  %v851_v38 = vmul.f32 %v2400_v11, %v2296_v10  ;;  %v1936_v33 = vld [vmem:[%s3197_s3 + $0x10] sm:$0xff] }
  0x61   : > { %v591_v51 = vadd.f32 %v559_v62, %v494_v18  ;;  %v852_v46 = vmul.f32 %v2402_v12, %v2296_v10  ;;  %1388 = vmatpush.bf16.msra.mxu0 %v1937_v4  ;;  %1955 = vmatpush.bf16.msra.mxu1 %v1937_v4  ;;  %v974_v52 = vadd.f32 %v942_v34, %v875_v25  ;;  %v2427_v61 = vld [vmem:[#allocation2 + $0x92] sm:$0xff]  ;;  %v2429_v62 = vld [vmem:[#allocation2 + $0x9a] sm:$0xff] }
  0x62   : > { %v975_v58 = vadd.f32 %v943_v35, %v876_v26  ;;  %v950_v59 = vmul.f32 %v2406_v20, %v2307_v17  ;;  %1956 = vmatpush.bf16.msra.mxu2 %v1937_v4  ;;  %1957 = vmatpush.bf16.msra.mxu3 %v1937_v4  ;;  %v689_v5 = vadd.f32 %v657_v7, %v590_v40  ;;  %v2433_v18 = vld [vmem:[#allocation2 + $0xc0] sm:$0xff]  ;;  %v2445_v7 = vld [vmem:[#allocation2 + $0xc8] sm:$0xff] }
  0x63   : > { %v690_v6 = vadd.f32 %v658_v19, %v591_v51  ;;  %v951_v13 = vmul.f32 %v2412_v39, %v2307_v17  ;;  %3285 = vst [vmem:[#allocation15_spill] sm:$0xff] %v2433_v18  ;;  %v1071_v55 = vadd.f32 %v2349_v41, %v974_v52  ;;  %v2439_v35 = vld [vmem:[%s3196_s2] ss:$0 sm:$0xff]  ;;  %v1047_v25 = vmul.f32 %v2418_v47, %v2320_v24  ;;  %v2453_v51 = vld [vmem:[#allocation2 + $0xc9] sm:$0xff] }
  0x64   : > { %v1072_v34 = vadd.f32 %v1040_v45, %v975_v58  ;;  %v1048_v4 = vmul.f32 %v2420_v32, %v2320_v24  ;;  %3286 = vst [vmem:[#allocation16_spill] sm:$0xff] %v2445_v7  ;;  %v786_v19 = vadd.f32 %v754_v27, %v689_v5  ;;  %v1144_v40 = vmul.f32 %v2427_v61, %v2351_v42  ;;  %v2451_v45 = vld [vmem:[#allocation2 + $0xc1] sm:$0xff] }
  0x65   : > { %v787_v26 = vadd.f32 %v755_v28, %v690_v6  ;;  %v1145_v41 = vmul.f32 %v2429_v62, %v2351_v42  ;;  %3287 = vst [vmem:[#allocation17_spill] sm:$0xff] %v2451_v45  ;;  %1389 = vmatpush.bf16.msra.mxu0 %v1936_v33  ;;  %1958 = vmatpush.bf16.msra.mxu1 %v1936_v33  ;;  %v1935_v52 = vld [vmem:[%s3197_s3 + $0x8] sm:$0xff] }
  0x66   : > { %3288 = vst [vmem:[#allocation18_spill] sm:$0xff] %v2453_v51  ;;  %v1168_v58 = vadd.f32 %v2371_v53, %v1071_v55  ;;  %v1169_v27 = vadd.f32 %v2375_v54, %v1072_v34  ;;  %v404_v28 = vmul.f32 %v2279_v60, %v2433_v18  ;;  %v2462_v5 = vld [vmem:[#allocation2 + $0xc2] sm:$0xff]  ;;  %v2464_v6 = vld [vmem:[#allocation2 + $0xca] sm:$0xff]  ;;  %1959 = vmatpush.bf16.msra.mxu2 %v1936_v33  ;;  %v2474_v34 = vld [vmem:[#allocation2 + $0xd8] sm:$0xff] }
  0x67   : > { %3289 = vst [vmem:[#allocation19_spill] sm:$0xff] %v2462_v5  ;;  %1960 = vmatpush.bf16.msra.mxu3 %v1936_v33  ;;  %v883_v50 = vadd.f32 %v851_v38, %v786_v19  ;;  %v884_v49 = vadd.f32 %v852_v46, %v787_v26  ;;  %v405_v48 = vmul.f32 %v2279_v60, %v2445_v7  ;;  %v1934_v33 = vld [vmem:[%s3197_s3] sm:$0xff] }
  0x68   : > { %3290 = vst [vmem:[#allocation20_spill] sm:$0xff] %v2464_v6  ;;  %v1204_v44 = vadd.f32 %v2439_v35, %v1168_v58  ;;  %v1205_v53 = vadd.f32 %v2439_v35, %v1169_v27  ;;  %v469_v54 = vmul.f32 %v2284_v1, %v2451_v45  ;;  %v470_v55 = vmul.f32 %v2284_v1, %v2453_v51  ;;  %v2483_v51 = vld [vmem:[#allocation2 + $0xe0] sm:$0xff] }
  0x69   : > { %v982_v18 = vadd.f32 %v950_v59, %v883_v50  ;;  %v983_v43 = vadd.f32 %v951_v13, %v884_v49  ;;  %v566_v38 = vmul.f32 %v2286_v2, %v2462_v5  ;;  %v567_v46 = vmul.f32 %v2286_v2, %v2464_v6  ;;  %1390 = vmatpush.bf16.msra.mxu0 %v1935_v52  ;;  %v2485_v50 = vld [vmem:[#allocation2 + $0xd9] sm:$0xff]  ;;  %v2489_v6 = vld [vmem:[#allocation2 + $0xe1] sm:$0xff] }
  0x6a   : > { %1961 = vmatpush.bf16.msra.mxu1 %v1935_v52  ;;  %v1236_v19 = vmax.f32 %v1204_v44, 0.0  ;;  %v1237_v26 = vmax.f32 %v1205_v53, 0.0  ;;  %v501_v58 = vadd.f32 %v469_v54, %v404_v28  ;;  %v502_v27 = vadd.f32 %v470_v55, %v405_v48  ;;  %3291 = vst [vmem:[#allocation21_spill] sm:$0xff] %v2485_v50  ;;  %1962 = vmatpush.bf16.msra.mxu2 %v1935_v52 }
  0x6b   : > { %1963 = vmatpush.bf16.msra.mxu3 %v1935_v52  ;;  %v1079_v49 = vadd.f32 %v1047_v25, %v982_v18  ;;  %v1080_v59 = vadd.f32 %v1048_v4, %v983_v43  ;;  %v665_v13 = vmul.f32 %v2474_v34, %v2288_v3  ;;  %3292 = vst [vmem:[#allocation22_spill] sm:$0xff] %v2489_v6  ;;  %v2495_v52 = vld [vmem:[#allocation2 + $0xda] sm:$0xff]  ;;  %v2497_v43 = vld [vmem:[#allocation2 + $0xe2] sm:$0xff]  ;;  %v2499_v18 = vld [vmem:[#allocation2 + $0xf0] sm:$0xff] }
  0x6c   : > { %v1268_v5 = vmin.f32 %v1236_v19, 6.0  ;;  %v1269_v45 = vmin.f32 %v1237_v26, 6.0  ;;  %v598_v7 = vadd.f32 %v566_v38, %v501_v58  ;;  %v599_v44 = vadd.f32 %v567_v46, %v502_v27  ;;  %3293 = vst [vmem:[#allocation23_spill] sm:$0xff] %v2495_v52  ;;  %v2507_v19 = vld [vmem:[#allocation2 + $0xf1] sm:$0xff]  ;;  %v2509_v26 = vld [vmem:[#allocation2 + $0xf9] sm:$0xff] }
  0x6d   : > { %v1176_v53 = vadd.f32 %v1144_v40, %v1079_v49  ;;  %v1177_v28 = vadd.f32 %v1145_v41, %v1080_v59  ;;  %v666_v48 = vmul.f32 %v2483_v51, %v2288_v3  ;;  %v762_v54 = vmul.f32 %v2485_v50, %v2294_v9  ;;  %3294 = vst [vmem:[#allocation24_spill] sm:$0xff] %v2497_v43  ;;  %v2503_v41 = vld [vmem:[#allocation2 + $0xf8] sm:$0xff] }
  0x6e   : > { %3295 = vst [vmem:[#allocation25_spill] sm:$0xff] %v2499_v18  ;;  %1391 = vmatpush.bf16.msra.mxu0 %v1934_v33  ;;  %1964 = vmatpush.bf16.msra.mxu1 %v1934_v33  ;;  %v1300_v25 = vpack.c.bf16 %v1269_v45, %v1268_v5  ;;  %v697_v4 = vadd.f32 %v665_v13, %v598_v7  ;;  %v2511_v58 = vld [vmem:[#allocation2 + $0xf2] sm:$0xff]  ;;  %v2519_v27 = vld [vmem:[#allocation2 + $0xfa] sm:$0xff] }
  0x6f   : > { %v763_v40 = vmul.f32 %v2489_v6, %v2294_v9  ;;  %3296 = vst [vmem:[#allocation26_spill] sm:$0xff] %v2503_v41  ;;  %1965 = vmatpush.bf16.msra.mxu2 %v1934_v33  ;;  %1966 = vmatpush.bf16.msra.mxu3 %v1934_v33  ;;  %v1212_v55 = vadd.f32 %v2439_v35, %v1176_v53  ;;  %v2523_v53 = vld [vmem:[#allocation2 + $0x120] sm:$0xff] }
  0x70   : > { %v1213_v38 = vadd.f32 %v2439_v35, %v1177_v28  ;;  %v698_v46 = vadd.f32 %v666_v48, %v599_v44  ;;  %3297 = vst [vmem:[#allocation27_spill] sm:$0xff] %v2507_v19  ;;  %v794_v45 = vadd.f32 %v762_v54, %v697_v4  ;;  %v859_v7 = vmul.f32 %v2495_v52, %v2296_v10  ;;  %v2525_v28 = vld [vmem:[#allocation2 + $0x128] sm:$0xff] }
  0x71   : > { %3298 = vst [vmem:[#allocation28_spill] sm:$0xff] %v2509_v26  ;;  %v860_v5 = vmul.f32 %v2497_v43, %v2296_v10  ;;  %v958_v33 = vmul.f32 %v2499_v18, %v2307_v17  ;;  %1392 = vmatmul.bf16.vlgmr.msra.gmra.mxu0 %v1300_v25  ;;  %v1244_v49 = vmax.f32 %v1212_v55, 0.0  ;;  %v959_v44 = vmul.f32 %v2503_v41, %v2307_v17  ;;  %v2527_v48 = vld [vmem:[#allocation2 + $0x121] sm:$0xff] }
  0x72   : > { %3299 = vst [vmem:[#allocation29_spill] sm:$0xff] %v2511_v58  ;;  %v1245_v59 = vmax.f32 %v1213_v38, 0.0  ;;  %v795_v13 = vadd.f32 %v763_v40, %v698_v46  ;;  %v891_v54 = vadd.f32 %v859_v7, %v794_v45  ;;  %v1055_v4 = vmul.f32 %v2507_v19, %v2320_v24  ;;  %v2535_v40 = vld [vmem:[#allocation2 + $0x129] sm:$0xff]  ;;  %v2543_v7 = vld [vmem:[#allocation2 + $0x138] sm:$0xff] }
  0x73   : > { %3300 = vst [vmem:[#allocation30_spill] sm:$0xff] %v2519_v27  ;;  %v1056_v18 = vmul.f32 %v2509_v26, %v2320_v24  ;;  %v1152_v25 = vmul.f32 %v2511_v58, %v2351_v42  ;;  %v2537_v55 = vld [vmem:[#allocation2 + $0x122] sm:$0xff]  ;;  %v1276_v38 = vmin.f32 %v1244_v49, 6.0  ;;  %v1153_v43 = vmul.f32 %v2519_v27, %v2351_v42  ;;  %v2541_v45 = vld [vmem:[#allocation2 + $0x12a] sm:$0xff] }
  0x74   : > { %3301 = vst [vmem:[#allocation31_spill] sm:$0xff] %v2523_v53  ;;  %v1277_v46 = vmin.f32 %v1245_v59, 6.0  ;;  %v892_v41 = vadd.f32 %v860_v5, %v795_v13  ;;  %v990_v19 = vadd.f32 %v958_v33, %v891_v54  ;;  %v412_v26 = vmul.f32 %v2279_v60, %v2523_v53  ;;  %v2551_v49 = vld [vmem:[#allocation2 + $0x140] sm:$0xff] }
  0x75   : > { %3302 = vst [vmem:[#allocation32_spill] sm:$0xff] %v2525_v28  ;;  %v413_v58 = vmul.f32 %v2279_v60, %v2525_v28  ;;  %v477_v52 = vmul.f32 %v2284_v1, %v2527_v48  ;;  %v2553_v5 = vld [vmem:[#allocation2 + $0x139] sm:$0xff]  ;;  %v478_v27 = vmul.f32 %v2284_v1, %v2535_v40  ;;  %v574_v33 = vmul.f32 %v2286_v2, %v2537_v55  ;;  %v2559_v54 = vld [vmem:[#allocation2 + $0x141] sm:$0xff] }
  0x76   : > { %3303 = vst [vmem:[#allocation33_spill] sm:$0xff] %v2527_v48  ;;  %v1304_v59 = vpack.c.bf16 %v1277_v46, %v1276_v38  ;;  %v991_v13 = vadd.f32 %v959_v44, %v892_v41  ;;  %v2561_v53 = vld [vmem:[#allocation2 + $0x13a] sm:$0xff]  ;;  %v1087_v28 = vadd.f32 %v1055_v4, %v990_v19  ;;  %v575_v48 = vmul.f32 %v2286_v2, %v2541_v45  ;;  %v2567_v38 = vld [vmem:[#allocation2 + $0x142] sm:$0xff]  ;;  %v2569_v41 = vld [vmem:[#allocation2 + $0x150] sm:$0xff] }
  0x77   : > { %3304 = vst [vmem:[#allocation34_spill] sm:$0xff] %v2535_v40  ;;  %v509_v6 = vadd.f32 %v477_v52, %v412_v26  ;;  %v673_v50 = vmul.f32 %v2543_v7, %v2288_v3  ;;  %v510_v46 = vadd.f32 %v478_v27, %v413_v58  ;;  %v770_v19 = vmul.f32 %v2553_v5, %v2294_v9  ;;  %v2575_v52 = vld [vmem:[#allocation2 + $0x158] sm:$0xff] }
  0x78   : > { %3305 = vst [vmem:[#allocation35_spill] sm:$0xff] %v2537_v55  ;;  %1412 = vmatmul.bf16.vlgmr.msra.gmra.mxu1 %v1304_v59  ;;  %v1088_v44 = vadd.f32 %v1056_v18, %v991_v13  ;;  %v674_v55 = vmul.f32 %v2551_v49, %v2288_v3  ;;  %v2577_v26 = vld [vmem:[#allocation2 + $0x151] sm:$0xff]  ;;  %v1184_v4 = vadd.f32 %v1152_v25, %v1087_v28  ;;  %v2583_v18 = vld [vmem:[#allocation2 + $0x159] sm:$0xff] }
  0x79   : > { %3306 = vst [vmem:[#allocation36_spill] sm:$0xff] %v2541_v45  ;;  %v606_v45 = vadd.f32 %v574_v33, %v509_v6  ;;  %v771_v40 = vmul.f32 %v2559_v54, %v2294_v9  ;;  %v867_v59 = vmul.f32 %v2561_v53, %v2296_v10  ;;  %v2585_v58 = vld [vmem:[#allocation2 + $0x152] sm:$0xff]  ;;  %v607_v13 = vadd.f32 %v575_v48, %v510_v46  ;;  %v2591_v28 = vld [vmem:[#allocation2 + $0x15a] sm:$0xff] }
  0x7a   : > { %3307 = vst [vmem:[#allocation37_spill] sm:$0xff] %v2551_v49  ;;  %v1185_v27 = vadd.f32 %v1153_v43, %v1088_v44  ;;  %v966_v49 = vmul.f32 %v2569_v41, %v2307_v17  ;;  %v1220_v6 = vadd.f32 %v2439_v35, %v1184_v4  ;;  %v967_v33 = vmul.f32 %v2575_v52, %v2307_v17 }
  0x7b   : > { %3308 = vst [vmem:[#allocation38_spill] sm:$0xff] %v2553_v5  ;;  %v868_v5 = vmul.f32 %v2567_v38, %v2296_v10  ;;  %v705_v25 = vadd.f32 %v673_v50, %v606_v45  ;;  %v706_v48 = vadd.f32 %v674_v55, %v607_v13  ;;  %v1064_v44 = vmul.f32 %v2583_v18, %v2320_v24 }
  0x7c   : > { %3309 = vst [vmem:[#allocation39_spill] sm:$0xff] %v2561_v53  ;;  %v1063_v53 = vmul.f32 %v2577_v26, %v2320_v24  ;;  %v1221_v43 = vadd.f32 %v2439_v35, %v1185_v27  ;;  %v1160_v46 = vmul.f32 %v2585_v58, %v2351_v42  ;;  %v1161_v50 = vmul.f32 %v2591_v28, %v2351_v42 }
  0x7d   : > { %3310 = vst [vmem:[#allocation40_spill] sm:$0xff] %v2567_v38  ;;  %v802_v38 = vadd.f32 %v770_v19, %v705_v25  ;;  %v390_v45 = vmul.f32 %v2292_v8, %v2279_v60  ;;  %v391_v27 = vmul.f32 %v2301_v14, %v2279_v60  ;;  %v455_v55 = vmul.f32 %v2303_v15, %v2284_v1 }
  0x7e   : > { %3311 = vst [vmem:[#allocation41_spill] sm:$0xff] %v2569_v41  ;;  %v1252_v41 = vmax.f32 %v1220_v6, 0.0  ;;  %v1253_v4 = vmax.f32 %v1221_v43, 0.0  ;;  %v456_v6 = vmul.f32 %v2305_v16, %v2284_v1  ;;  %v552_v19 = vmul.f32 %v2314_v21, %v2286_v2 }
  0x7f   : > { %3312 = vst [vmem:[#allocation42_spill] sm:$0xff] %v2575_v52  ;;  %v803_v52 = vadd.f32 %v771_v40, %v706_v48  ;;  %v553_v8 = vmul.f32 %v2316_v22, %v2286_v2  ;;  %v651_v14 = vmul.f32 %v2318_v23, %v2288_v3  ;;  %v652_v15 = vmul.f32 %v2326_v29, %v2288_v3 }
  0x80   : > { %3313 = vst [vmem:[#allocation43_spill] sm:$0xff] %v2583_v18  ;;  %v1284_v13 = vmin.f32 %v1252_v41, 6.0  ;;  %v899_v18 = vadd.f32 %v867_v59, %v802_v38  ;;  %v1285_v25 = vmin.f32 %v1253_v4, 6.0  ;;  %v488_v43 = vadd.f32 %v456_v6, %v391_v27  ;;  %v2621_v38 = vld [vmem:[#allocation2 + $0x48] sm:$0xff]  ;;  %v2641_v27 = vld [vmem:[#allocation2 + $0x52] sm:$0xff] }
  0x81   : > { %3314 = vst [vmem:[#allocation44_spill] sm:$0xff] %v2585_v58  ;;  %v487_v58 = vadd.f32 %v455_v55, %v390_v45  ;;  %v748_v21 = vmul.f32 %v2328_v30, %v2294_v9  ;;  %v845_v48 = vmul.f32 %v2340_v36, %v2296_v10  ;;  %v2633_v45 = vld [vmem:[#allocation2 + $0x51] sm:$0xff] }
  0x82   : > { %3315 = vst [vmem:[#allocation45_spill] sm:$0xff] %v2591_v28  ;;  %v900_v28 = vadd.f32 %v868_v5, %v803_v52  ;;  %v998_v40 = vadd.f32 %v966_v49, %v899_v18  ;;  %v1308_v16 = vpack.c.bf16 %v1285_v25, %v1284_v13  ;;  %v2625_v5 = vld [vmem:[#allocation2 + $0x50] sm:$0xff]  ;;  %v585_v49 = vadd.f32 %v553_v8, %v488_v43 }
  0x83   : > { %v584_v59 = vadd.f32 %v552_v19, %v487_v58  ;;  %v2627_v52 = vld [vmem:[#allocation2 + $0x49] sm:$0xff]  ;;  %v749_v18 = vmul.f32 %v2330_v31, %v2294_v9  ;;  %v945_v6 = vmul.f32 %v2625_v5, %v2307_v17 }
  0x84   : > { %v999_v41 = vadd.f32 %v967_v33, %v900_v28  ;;  %v1095_v22 = vadd.f32 %v1063_v53, %v998_v40  ;;  %v2635_v4 = vld [vmem:[#allocation2 + $0x4a] sm:$0xff]  ;;  %1432 = vmatmul.bf16.vlgmr.msra.gmra.mxu2 %v1308_v16  ;;  %v846_v33 = vmul.f32 %v2342_v37, %v2296_v10  ;;  %v944_v53 = vmul.f32 %v2621_v38, %v2307_v17 }
  0x85   : > { %v683_v28 = vadd.f32 %v651_v14, %v584_v59  ;;  %v684_v13 = vadd.f32 %v652_v15, %v585_v49  ;;  %v1041_v19 = vmul.f32 %v2627_v52, %v2320_v24  ;;  %v1138_v40 = vmul.f32 %v2635_v4, %v2351_v42 }
  0x86   : > { %v1096_v58 = vadd.f32 %v1064_v44, %v999_v41  ;;  %v1192_v55 = vadd.f32 %v1160_v46, %v1095_v22  ;;  %v1042_v44 = vmul.f32 %v2633_v45, %v2320_v24  ;;  %v1139_v46 = vmul.f32 %v2641_v27, %v2351_v42 }
  0x87   : > { %v780_v8 = vadd.f32 %v748_v21, %v683_v28  ;;  %v781_v14 = vadd.f32 %v749_v18, %v684_v13  ;;  %v398_v15 = vmul.f32 %v2379_v56, %v2279_v60  ;;  %v463_v59 = vmul.f32 %v2391_v63, %v2284_v1 }
  0x88   : > { %v1193_v25 = vadd.f32 %v1161_v50, %v1096_v58  ;;  %v1228_v43 = vadd.f32 %v2439_v35, %v1192_v55  ;;  %v399_v50 = vmul.f32 %v2381_v57, %v2279_v60  ;;  %v464_v49 = vmul.f32 %v2393_v0, %v2284_v1 }
  0x89   : > { %v877_v41 = vadd.f32 %v845_v48, %v780_v8  ;;  %v878_v22 = vadd.f32 %v846_v33, %v781_v14  ;;  %v560_v18 = vmul.f32 %v2400_v11, %v2286_v2  ;;  %v495_v56 = vadd.f32 %v463_v59, %v398_v15  ;;  %v2679_v15 = vld [vmem:[#allocation2 + $0xa9] sm:$0xff]  ;;  %v2683_v59 = vld [vmem:[#allocation2 + $0xb1] sm:$0xff] }
  0x8a   : > { %v1229_v16 = vadd.f32 %v2439_v35, %v1193_v25  ;;  %v1260_v21 = vmax.f32 %v1228_v43, 0.0  ;;  %v561_v48 = vmul.f32 %v2402_v12, %v2286_v2  ;;  %v496_v57 = vadd.f32 %v464_v49, %v399_v50  ;;  %v2671_v43 = vld [vmem:[#allocation2 + $0xa8] sm:$0xff]  ;;  %3316 = vst [vmem:[#allocation46_spill] sm:$0xff] %v2683_v59 }
  0x8b   : > { %v976_v28 = vadd.f32 %v944_v53, %v877_v41  ;;  %v977_v13 = vadd.f32 %v945_v6, %v878_v22  ;;  %v659_v63 = vmul.f32 %v2406_v20, %v2288_v3  ;;  %v592_v8 = vadd.f32 %v560_v18, %v495_v56  ;;  %v2677_v6 = vld [vmem:[#allocation2 + $0xb0] sm:$0xff] }
  0x8c   : > { %v1261_v58 = vmax.f32 %v1229_v16, 0.0  ;;  %v1292_v55 = vmin.f32 %v1260_v21, 6.0  ;;  %v660_v0 = vmul.f32 %v2412_v39, %v2288_v3  ;;  %v593_v53 = vadd.f32 %v561_v48, %v496_v57 }
  0x8d   : > { %v1073_v33 = vadd.f32 %v1041_v19, %v976_v28  ;;  %v1074_v11 = vadd.f32 %v1042_v44, %v977_v13  ;;  %v756_v14 = vmul.f32 %v2418_v47, %v2294_v9  ;;  %v757_v12 = vmul.f32 %v2420_v32, %v2294_v9  ;;  %v2685_v44 = vld [vmem:[#allocation2 + $0xaa] sm:$0xff] }
  0x8e   : > { %v1293_v25 = vmin.f32 %v1261_v58, 6.0  ;;  %v691_v41 = vadd.f32 %v659_v63, %v592_v8  ;;  %v853_v50 = vmul.f32 %v2427_v61, %v2296_v10  ;;  %3317 = vst [vmem:[#allocation47_spill] sm:$0xff] %v2685_v44  ;;  %v692_v22 = vadd.f32 %v660_v0, %v593_v53  ;;  %v2691_v58 = vld [vmem:[#allocation2 + $0xb2] sm:$0xff] }
  0x8f   : > { %v1170_v19 = vadd.f32 %v1138_v40, %v1073_v33  ;;  %v1171_v21 = vadd.f32 %v1139_v46, %v1074_v11  ;;  %v854_v49 = vmul.f32 %v2429_v62, %v2296_v10  ;;  %v952_v18 = vmul.f32 %v2671_v43, %v2307_v17  ;;  %3318 = vst [vmem:[#allocation48_spill] sm:$0xff] %v2691_v58 }
  0x90   : > { %v1312_v16 = vpack.c.bf16 %v1293_v25, %v1292_v55  ;;  %v788_v28 = vadd.f32 %v756_v14, %v691_v41  ;;  %v953_v56 = vmul.f32 %v2677_v6, %v2307_v17  ;;  %v1049_v48 = vmul.f32 %v2679_v15, %v2320_v24  ;;  %v3319_v14 = vld [vmem:[#allocation21_spill] sm:$0xff]  ;;  %v3320_v41 = vld [vmem:[#allocation22_spill] sm:$0xff] }
  0x91   : > { %v1206_v40 = vadd.f32 %v2439_v35, %v1170_v19  ;;  %v1207_v46 = vadd.f32 %v2439_v35, %v1171_v21  ;;  %v789_v55 = vadd.f32 %v757_v12, %v692_v22  ;;  %v1050_v13 = vmul.f32 %v2683_v59, %v2320_v24 }
  0x92   : > { %1452 = vmatmul.bf16.vlgmr.msra.gmra.mxu3 %v1312_v16  ;;  %v1146_v57 = vmul.f32 %v2685_v44, %v2351_v42  ;;  %v885_v25 = vadd.f32 %v853_v50, %v788_v28  ;;  %v1147_v33 = vmul.f32 %v2691_v58, %v2351_v42  ;;  %v406_v8 = vmul.f32 %v2474_v34, %v2279_v60  ;;  %v3321_v50 = vld [vmem:[#allocation23_spill] sm:$0xff]  ;;  %v3322_v34 = vld [vmem:[#allocation24_spill] sm:$0xff] }
  0x93   : > { %v1238_v63 = vmax.f32 %v1206_v40, 0.0  ;;  %v1239_v0 = vmax.f32 %v1207_v46, 0.0  ;;  %v886_v11 = vadd.f32 %v854_v49, %v789_v55  ;;  %v407_v53 = vmul.f32 %v2483_v51, %v2279_v60  ;;  %v3323_v51 = vld [vmem:[#allocation25_spill] sm:$0xff] }
  0x94   : > { %v471_v12 = vmul.f32 %v3319_v14, %v2284_v1  ;;  %v984_v19 = vadd.f32 %v952_v18, %v885_v25  ;;  %v472_v21 = vmul.f32 %v3320_v41, %v2284_v1  ;;  %v568_v22 = vmul.f32 %v3321_v50, %v2286_v2  ;;  %v2721_v25 = vld [vmem:[#allocation2 + $0x108] sm:$0xff] }
  0x95   : > { %v1270_v16 = vmin.f32 %v1238_v63, 6.0  ;;  %v1271_v40 = vmin.f32 %v1239_v0, 6.0  ;;  %v985_v28 = vadd.f32 %v953_v56, %v886_v11  ;;  %v569_v49 = vmul.f32 %v3322_v34, %v2286_v2  ;;  %v3324_v63 = vld [vmem:[#allocation26_spill] sm:$0xff]  ;;  %3325 = vst [vmem:[#allocation21_spill] sm:$0xff] %v2721_v25  ;;  %v3326_v0 = vld [vmem:[#allocation27_spill] sm:$0xff] }
  0x96   : > { %v503_v58 = vadd.f32 %v471_v12, %v406_v8  ;;  %v1081_v46 = vadd.f32 %v1049_v48, %v984_v19  ;;  %v504_v55 = vadd.f32 %v472_v21, %v407_v53  ;;  %v667_v44 = vmul.f32 %v3323_v51, %v2288_v3  ;;  %v2725_v8 = vld [vmem:[#allocation2 + $0x110] sm:$0xff]  ;;  %v3329_v12 = vld [vmem:[#allocation28_spill] sm:$0xff]  ;;  %v3330_v21 = vld [vmem:[#allocation29_spill] sm:$0xff] }
  0x97   : > { %v668_v18 = vmul.f32 %v3324_v63, %v2288_v3  ;;  %v1301_v14 = vpack.c.bf16 %v1271_v40, %v1270_v16  ;;  %v1082_v41 = vadd.f32 %v1050_v13, %v985_v28  ;;  %v764_v56 = vmul.f32 %v3326_v0, %v2294_v9  ;;  %3327 = vst [vmem:[#allocation22_spill] sm:$0xff] %v2725_v8  ;;  %v2727_v11 = vld [vmem:[#allocation2 + $0x109] sm:$0xff]  ;;  %v2733_v34 = vld [vmem:[#allocation2 + $0x111] sm:$0xff] }
  0x98   : > { %v600_v59 = vadd.f32 %v568_v22, %v503_v58  ;;  %3328 = vst [vmem:[#allocation23_spill] sm:$0xff] %v2727_v11  ;;  %v1178_v48 = vadd.f32 %v1146_v57, %v1081_v46  ;;  %v601_v53 = vadd.f32 %v569_v49, %v504_v55  ;;  %v765_v19 = vmul.f32 %v3329_v12, %v2294_v9  ;;  %v2735_v16 = vld [vmem:[#allocation2 + $0x10a] sm:$0xff]  ;;  %v2741_v28 = vld [vmem:[#allocation2 + $0x112] sm:$0xff] }
  0x99   : > { %v861_v50 = vmul.f32 %v3330_v21, %v2296_v10  ;;  %3331 = vst [vmem:[#allocation24_spill] sm:$0xff] %v2733_v34  ;;  %1397 = vmatmul.bf16.gmra.mxu0 %v1301_v14  ;;  %v1179_v58 = vadd.f32 %v1147_v33, %v1082_v41  ;;  %v3333_v22 = vld [vmem:[#allocation30_spill] sm:$0xff]  ;;  %v960_v57 = vmul.f32 %v2721_v25, %v2307_v17 }
  0x9a   : > { %3332 = vst [vmem:[#allocation25_spill] sm:$0xff] %v2735_v16  ;;  %v699_v13 = vadd.f32 %v667_v44, %v600_v59  ;;  %v862_v40 = vmul.f32 %v3333_v22, %v2296_v10  ;;  %v1214_v49 = vadd.f32 %v2439_v35, %v1178_v48  ;;  %v700_v46 = vadd.f32 %v668_v18, %v601_v53 }
  0x9b   : > { %3334 = vst [vmem:[#allocation49_spill] sm:$0xff] %v2741_v28  ;;  %v961_v55 = vmul.f32 %v2725_v8, %v2307_v17  ;;  %v1057_v21 = vmul.f32 %v2727_v11, %v2320_v24  ;;  %v1215_v33 = vadd.f32 %v2439_v35, %v1179_v58  ;;  %v1058_v44 = vmul.f32 %v2733_v34, %v2320_v24  ;;  %v3335_v11 = vld [vmem:[#allocation37_spill] sm:$0xff] }
  0x9c   : > { %v796_v59 = vadd.f32 %v764_v56, %v699_v13  ;;  %v1154_v14 = vmul.f32 %v2735_v16, %v2351_v42  ;;  %v1246_v41 = vmax.f32 %v1214_v49, 0.0  ;;  %v797_v25 = vadd.f32 %v765_v19, %v700_v46  ;;  %v3336_v56 = vld [vmem:[#allocation38_spill] sm:$0xff]  ;;  %v3337_v19 = vld [vmem:[#allocation39_spill] sm:$0xff] }
  0x9d   : > { %v1155_v18 = vmul.f32 %v2741_v28, %v2351_v42  ;;  %v414_v48 = vmul.f32 %v2543_v7, %v2279_v60  ;;  %v1247_v53 = vmax.f32 %v1215_v33, 0.0  ;;  %v415_v58 = vmul.f32 %v3335_v11, %v2279_v60  ;;  %v3338_v7 = vld [vmem:[#allocation40_spill] sm:$0xff]  ;;  %v3339_v11 = vld [vmem:[#allocation41_spill] sm:$0xff] }
  0x9e   : > { %v893_v8 = vadd.f32 %v861_v50, %v796_v59  ;;  %v479_v13 = vmul.f32 %v3336_v56, %v2284_v1  ;;  %v1278_v34 = vmin.f32 %v1246_v41, 6.0  ;;  %v894_v22 = vadd.f32 %v862_v40, %v797_v25  ;;  %v3340_v41 = vld [vmem:[#allocation42_spill] sm:$0xff] }
  0x9f   : > { %v480_v49 = vmul.f32 %v2559_v54, %v2284_v1  ;;  %v576_v46 = vmul.f32 %v3337_v19, %v2286_v2  ;;  %v1279_v28 = vmin.f32 %v1247_v53, 6.0  ;;  %v577_v50 = vmul.f32 %v3338_v7, %v2286_v2  ;;  %v2771_v40 = vld [vmem:[#allocation2 + $0x168] sm:$0xff]  ;;  %v3342_v53 = vld [vmem:[#allocation43_spill] sm:$0xff] }
  0xa0   : > { %v992_v16 = vadd.f32 %v960_v57, %v893_v8  ;;  %v511_v12 = vadd.f32 %v479_v13, %v414_v48  ;;  %v993_v33 = vadd.f32 %v961_v55, %v894_v22  ;;  %v675_v0 = vmul.f32 %v3339_v11, %v2288_v3  ;;  %3341 = vst [vmem:[#allocation37_spill] sm:$0xff] %v2771_v40  ;;  %v2775_v57 = vld [vmem:[#allocation2 + $0x170] sm:$0xff]  ;;  %v3343_v13 = vld [vmem:[#allocation44_spill] sm:$0xff] }
  0xa1   : > { %v512_v59 = vadd.f32 %v480_v49, %v415_v58  ;;  %v676_v25 = vmul.f32 %v3340_v41, %v2288_v3  ;;  %v1305_v54 = vpack.c.bf16 %v1279_v28, %v1278_v34  ;;  %v772_v8 = vmul.f32 %v2577_v26, %v2294_v9  ;;  %v2777_v48 = vld [vmem:[#allocation2 + $0x169] sm:$0xff]  ;;  %v2783_v19 = vld [vmem:[#allocation2 + $0x171] sm:$0xff] }
  0xa2   : > { %v1089_v56 = vadd.f32 %v1057_v21, %v992_v16  ;;  %v608_v63 = vadd.f32 %v576_v46, %v511_v12  ;;  %v1090_v22 = vadd.f32 %v1058_v44, %v993_v33  ;;  %v773_v58 = vmul.f32 %v3342_v53, %v2294_v9  ;;  %3344 = vst [vmem:[#allocation38_spill] sm:$0xff] %v2783_v19  ;;  %v2785_v34 = vld [vmem:[#allocation2 + $0x16a] sm:$0xff]  ;;  %v3346_v16 = vld [vmem:[#allocation45_spill] sm:$0xff]  ;;  %v2791_v46 = vld [vmem:[#allocation2 + $0x172] sm:$0xff] }
  0xa3   : > { %v609_v55 = vadd.f32 %v577_v50, %v512_v59  ;;  %v869_v49 = vmul.f32 %v3343_v13, %v2296_v10  ;;  %3345 = vst [vmem:[#allocation39_spill] sm:$0xff] %v2785_v34  ;;  %1417 = vmatmul.bf16.gmra.mxu1 %v1305_v54  ;;  %v870_v28 = vmul.f32 %v3346_v16, %v2296_v10 }
  0xa4   : > { %v1186_v12 = vadd.f32 %v1154_v14, %v1089_v56  ;;  %v707_v21 = vadd.f32 %v675_v0, %v608_v63  ;;  %v968_v44 = vmul.f32 %v2771_v40, %v2307_v17  ;;  %3347 = vst [vmem:[#allocation40_spill] sm:$0xff] %v2791_v46  ;;  %v1187_v7 = vadd.f32 %v1155_v18, %v1090_v22 }
  0xa5   : > { %v708_v50 = vadd.f32 %v676_v25, %v609_v55  ;;  %v969_v33 = vmul.f32 %v2775_v57, %v2307_v17  ;;  %v1065_v59 = vmul.f32 %v2777_v48, %v2320_v24  ;;  %v1066_v63 = vmul.f32 %v2783_v19, %v2320_v24 }
  0xa6   : > { %v1222_v54 = vadd.f32 %v2439_v35, %v1186_v12  ;;  %v804_v14 = vadd.f32 %v772_v8, %v707_v21  ;;  %v1162_v0 = vmul.f32 %v2785_v34, %v2351_v42  ;;  %v1223_v56 = vadd.f32 %v2439_v35, %v1187_v7 }
  0xa7   : > { %v805_v40 = vadd.f32 %v773_v58, %v708_v50  ;;  %v1163_v18 = vmul.f32 %v2791_v46, %v2351_v42  ;;  %v392_v25 = vmul.f32 %v2318_v23, %v2279_v60  ;;  %v393_v8 = vmul.f32 %v2326_v29, %v2279_v60 }
  0xa8   : > { %v1254_v22 = vmax.f32 %v1222_v54, 0.0  ;;  %v901_v55 = vadd.f32 %v869_v49, %v804_v14  ;;  %v457_v12 = vmul.f32 %v2328_v30, %v2284_v1  ;;  %v1255_v21 = vmax.f32 %v1223_v56, 0.0 }
  0xa9   : > { %v902_v19 = vadd.f32 %v870_v28, %v805_v40  ;;  %v458_v7 = vmul.f32 %v2330_v31, %v2284_v1  ;;  %v554_v58 = vmul.f32 %v2340_v36, %v2286_v2  ;;  %v555_v23 = vmul.f32 %v2342_v37, %v2286_v2 }
  0xaa   : > { %v1286_v50 = vmin.f32 %v1254_v22, 6.0  ;;  %v1000_v46 = vadd.f32 %v968_v44, %v901_v55  ;;  %v489_v34 = vadd.f32 %v457_v12, %v392_v25  ;;  %v1287_v49 = vmin.f32 %v1255_v21, 6.0  ;;  %v3348_v22 = vld [vmem:[#allocation9_spill] sm:$0xff] }
  0xab   : > { %v1001_v54 = vadd.f32 %v969_v33, %v902_v19  ;;  %v490_v29 = vadd.f32 %v458_v7, %v393_v8  ;;  %v653_v30 = vmul.f32 %v2621_v38, %v2288_v3  ;;  %v654_v31 = vmul.f32 %v2625_v5, %v2288_v3  ;;  %v3349_v8 = vld [vmem:[#allocation10_spill] sm:$0xff] }
  0xac   : > { %v1097_v14 = vadd.f32 %v1065_v59, %v1000_v46  ;;  %v586_v40 = vadd.f32 %v554_v58, %v489_v34  ;;  %v750_v36 = vmul.f32 %v2627_v52, %v2294_v9  ;;  %v1309_v28 = vpack.c.bf16 %v1287_v49, %v1286_v50  ;;  %v3351_v58 = vld [vmem:[#allocation12_spill] sm:$0xff] }
  0xad   : > { %v1098_v44 = vadd.f32 %v1066_v63, %v1001_v54  ;;  %v587_v56 = vadd.f32 %v555_v23, %v490_v29  ;;  %v751_v37 = vmul.f32 %v2633_v45, %v2294_v9  ;;  %v847_v33 = vmul.f32 %v2635_v4, %v2296_v10  ;;  %v3353_v29 = vld [vmem:[#allocation14_spill] sm:$0xff] }
  0xae   : > { %v1194_v25 = vadd.f32 %v1162_v0, %v1097_v14  ;;  %v685_v19 = vadd.f32 %v653_v30, %v586_v40  ;;  %v848_v34 = vmul.f32 %v2641_v27, %v2296_v10  ;;  %1437 = vmatmul.bf16.gmra.mxu2 %v1309_v28  ;;  %v946_v55 = vmul.f32 %v2307_v17, %v3348_v22  ;;  %v3350_v0 = vld [vmem:[#allocation11_spill] sm:$0xff] }
  0xaf   : > { %v1195_v46 = vadd.f32 %v1163_v18, %v1098_v44  ;;  %v686_v59 = vadd.f32 %v654_v31, %v587_v56  ;;  %v947_v63 = vmul.f32 %v2307_v17, %v3349_v8  ;;  %v1043_v7 = vmul.f32 %v2320_v24, %v3350_v0  ;;  %v3352_v18 = vld [vmem:[#allocation13_spill] sm:$0xff] }
  0xb0   : > { %v1230_v12 = vadd.f32 %v2439_v35, %v1194_v25  ;;  %v782_v21 = vadd.f32 %v750_v36, %v685_v19  ;;  %v1044_v50 = vmul.f32 %v2320_v24, %v3351_v58  ;;  %v1140_v54 = vmul.f32 %v2351_v42, %v3352_v18  ;;  %v3355_v58 = vld [vmem:[#allocation47_spill] sm:$0xff] }
  0xb1   : > { %v1231_v23 = vadd.f32 %v2439_v35, %v1195_v46  ;;  %v783_v49 = vadd.f32 %v751_v37, %v686_v59  ;;  %v1141_v30 = vmul.f32 %v2351_v42, %v3353_v29  ;;  %v400_v31 = vmul.f32 %v2406_v20, %v2279_v60 }
  0xb2   : > { %v1262_v14 = vmax.f32 %v1230_v12, 0.0  ;;  %v879_v40 = vadd.f32 %v847_v33, %v782_v21  ;;  %v401_v36 = vmul.f32 %v2412_v39, %v2279_v60  ;;  %v465_v56 = vmul.f32 %v2418_v47, %v2284_v1 }
  0xb3   : > { %v1263_v28 = vmax.f32 %v1231_v23, 0.0  ;;  %v880_v44 = vadd.f32 %v848_v34, %v783_v49  ;;  %v466_v37 = vmul.f32 %v2420_v32, %v2284_v1  ;;  %v562_v46 = vmul.f32 %v2427_v61, %v2286_v2  ;;  %v3356_v23 = vld [vmem:[#allocation48_spill] sm:$0xff] }
  0xb4   : > { %v1294_v25 = vmin.f32 %v1262_v14, 6.0  ;;  %v978_v19 = vadd.f32 %v946_v55, %v879_v40  ;;  %v563_v33 = vmul.f32 %v2429_v62, %v2286_v2  ;;  %v497_v22 = vadd.f32 %v465_v56, %v400_v31  ;;  %v3354_v62 = vld [vmem:[#allocation46_spill] sm:$0xff]  ;;  %v3357_v40 = vld [vmem:[#allocation15_spill] sm:$0xff] }
  0xb5   : > { %v1295_v20 = vmin.f32 %v1263_v28, 6.0  ;;  %v979_v59 = vadd.f32 %v947_v63, %v880_v44  ;;  %v498_v39 = vadd.f32 %v466_v37, %v401_v36  ;;  %v661_v34 = vmul.f32 %v2671_v43, %v2288_v3  ;;  %v3358_v36 = vld [vmem:[#allocation16_spill] sm:$0xff]  ;;  %v3359_v28 = vld [vmem:[#allocation17_spill] sm:$0xff]  ;;  %v3360_v56 = vld [vmem:[#allocation18_spill] sm:$0xff] }
  0xb6   : > { %v1075_v8 = vadd.f32 %v1043_v7, %v978_v19  ;;  %v662_v47 = vmul.f32 %v2677_v6, %v2288_v3  ;;  %v758_v32 = vmul.f32 %v2679_v15, %v2294_v9  ;;  %v594_v61 = vadd.f32 %v562_v46, %v497_v22  ;;  %v3361_v46 = vld [vmem:[#allocation19_spill] sm:$0xff] }
  0xb7   : > { %v1313_v55 = vpack.c.bf16 %v1295_v20, %v1294_v25  ;;  %v1076_v12 = vadd.f32 %v1044_v50, %v979_v59  ;;  %v595_v21 = vadd.f32 %v563_v33, %v498_v39  ;;  %v759_v63 = vmul.f32 %v3354_v62, %v2294_v9  ;;  %v3362_v59 = vld [vmem:[#allocation20_spill] sm:$0xff] }
  0xb8   : > { %v1172_v0 = vadd.f32 %v1140_v54, %v1075_v8  ;;  %v855_v7 = vmul.f32 %v3355_v58, %v2296_v10  ;;  %v856_v49 = vmul.f32 %v3356_v23, %v2296_v10  ;;  %v693_v29 = vadd.f32 %v661_v34, %v594_v61  ;;  %v3363_v8 = vld [vmem:[#allocation26_spill] sm:$0xff]  ;;  %v3364_v61 = vld [vmem:[#allocation27_spill] sm:$0xff] }
  0xb9   : > { %1457 = vmatmul.bf16.gmra.mxu3 %v1313_v55  ;;  %v1173_v18 = vadd.f32 %v1141_v30, %v1076_v12  ;;  %v694_v14 = vadd.f32 %v662_v47, %v595_v21  ;;  %v954_v31 = vmul.f32 %v2307_v17, %v3357_v40  ;;  %v955_v54 = vmul.f32 %v2307_v17, %v3358_v36 }
  0xba   : > { %v1208_v50 = vadd.f32 %v2439_v35, %v1172_v0  ;;  %v1051_v44 = vmul.f32 %v2320_v24, %v3359_v28  ;;  %v1052_v37 = vmul.f32 %v2320_v24, %v3360_v56  ;;  %v790_v19 = vadd.f32 %v758_v32, %v693_v29  ;;  %v3365_v0 = vld [vmem:[#allocation28_spill] sm:$0xff] }
  0xbb   : > { %v1209_v25 = vadd.f32 %v2439_v35, %v1173_v18  ;;  %v791_v30 = vadd.f32 %v759_v63, %v694_v14  ;;  %v1148_v33 = vmul.f32 %v2351_v42, %v3361_v46  ;;  %v1149_v22 = vmul.f32 %v2351_v42, %v3362_v59  ;;  %v3366_v18 = vld [vmem:[#allocation29_spill] sm:$0xff]  ;;  %v3367_v14 = vld [vmem:[#allocation30_spill] sm:$0xff] }
  0xbc   : > { %v1240_v20 = vmax.f32 %v1208_v50, 0.0  ;;  %v408_v39 = vmul.f32 %v3323_v51, %v2279_v60  ;;  %v409_v34 = vmul.f32 %v3363_v8, %v2279_v60  ;;  %v887_v55 = vadd.f32 %v855_v7, %v790_v19  ;;  %v3368_v7 = vld [vmem:[#allocation21_spill] sm:$0xff] }
  0xbd   : > { %v1241_v47 = vmax.f32 %v1209_v25, 0.0  ;;  %v888_v12 = vadd.f32 %v856_v49, %v791_v30  ;;  %v473_v32 = vmul.f32 %v3364_v61, %v2284_v1  ;;  %v474_v63 = vmul.f32 %v3365_v0, %v2284_v1  ;;  %v3369_v25 = vld [vmem:[#allocation22_spill] sm:$0xff]  ;;  %v3370_v30 = vld [vmem:[#allocation23_spill] sm:$0xff] }
  0xbe   : > { %v1272_v21 = vmin.f32 %v1240_v20, 6.0  ;;  %v570_v29 = vmul.f32 %v3366_v18, %v2286_v2  ;;  %v571_v40 = vmul.f32 %v3367_v14, %v2286_v2  ;;  %v986_v50 = vadd.f32 %v954_v31, %v887_v55  ;;  %v3374_v18 = vld [vmem:[#allocation31_spill] sm:$0xff]  ;;  %v3376_v14 = vld [vmem:[#allocation33_spill] sm:$0xff] }
  0xbf   : > { %v1273_v51 = vmin.f32 %v1241_v47, 6.0  ;;  %v987_v36 = vadd.f32 %v955_v54, %v888_v12  ;;  %v505_v28 = vadd.f32 %v473_v32, %v408_v39  ;;  %v506_v56 = vadd.f32 %v474_v63, %v409_v34  ;;  %v3371_v47 = vld [vmem:[#allocation24_spill] sm:$0xff]  ;;  %v3372_v54 = vld [vmem:[#allocation25_spill] sm:$0xff] }
  0xc0   : > { %v669_v49 = vmul.f32 %v3368_v7, %v2288_v3  ;;  %v670_v19 = vmul.f32 %v3369_v25, %v2288_v3  ;;  %v766_v46 = vmul.f32 %v3370_v30, %v2294_v9  ;;  %v1083_v59 = vadd.f32 %v1051_v44, %v986_v50  ;;  %v3373_v34 = vld [vmem:[#allocation49_spill] sm:$0xff] }
  0xc1   : > { %v1302_v20 = vpack.c.bf16 %v1273_v51, %v1272_v21  ;;  %v1084_v8 = vadd.f32 %v1052_v37, %v987_v36  ;;  %v602_v61 = vadd.f32 %v570_v29, %v505_v28  ;;  %v603_v0 = vadd.f32 %v571_v40, %v506_v56  ;;  %v3375_v37 = vld [vmem:[#allocation32_spill] sm:$0xff]  ;;  %v3377_v51 = vld [vmem:[#allocation34_spill] sm:$0xff] }
  0xc2   : > { %v767_v31 = vmul.f32 %v3371_v47, %v2294_v9  ;;  %v863_v39 = vmul.f32 %v3372_v54, %v2296_v10  ;;  %v864_v55 = vmul.f32 %v3373_v34, %v2296_v10  ;;  %v1180_v12 = vadd.f32 %v1148_v33, %v1083_v59 }
  0xc3   : > { %1402 = vmatmul.bf16.gmra.mxu0 %v1302_v20  ;;  %v1181_v32 = vadd.f32 %v1149_v22, %v1084_v8  ;;  %v701_v63 = vadd.f32 %v669_v49, %v602_v61  ;;  %v962_v21 = vmul.f32 %v2307_v17, %v3374_v18  ;;  %v702_v44 = vadd.f32 %v670_v19, %v603_v0  ;;  %v3378_v22 = vld [vmem:[#allocation35_spill] sm:$0xff]  ;;  %v3379_v20 = vld [vmem:[#allocation36_spill] sm:$0xff] }
  0xc4   : > { %v963_v29 = vmul.f32 %v2307_v17, %v3375_v37  ;;  %v1059_v40 = vmul.f32 %v2320_v24, %v3376_v14  ;;  %v1060_v50 = vmul.f32 %v2320_v24, %v3377_v51  ;;  %v1216_v36 = vadd.f32 %v2439_v35, %v1180_v12 }
  0xc5   : > { %v1217_v28 = vadd.f32 %v2439_v35, %v1181_v32  ;;  %v798_v33 = vadd.f32 %v766_v46, %v701_v63  ;;  %v1156_v56 = vmul.f32 %v2351_v42, %v3378_v22  ;;  %v799_v49 = vadd.f32 %v767_v31, %v702_v44 }
  0xc6   : > { %v1157_v19 = vmul.f32 %v2351_v42, %v3379_v20  ;;  %v416_v59 = vmul.f32 %v3339_v11, %v2279_v60  ;;  %v417_v8 = vmul.f32 %v3340_v41, %v2279_v60  ;;  %v1248_v61 = vmax.f32 %v1216_v36, 0.0 }
  0xc7   : > { %v1249_v0 = vmax.f32 %v1217_v28, 0.0  ;;  %v895_v18 = vadd.f32 %v863_v39, %v798_v33  ;;  %v481_v12 = vmul.f32 %v2577_v26, %v2284_v1  ;;  %v896_v46 = vadd.f32 %v864_v55, %v799_v49  ;;  %v3380_v39 = vld [vmem:[#allocation37_spill] sm:$0xff]  ;;  %v2939_v33 = vld [vmem:[#allocation2 + $0x188] sm:$0xff] }
  0xc8   : > { %v482_v32 = vmul.f32 %v3342_v53, %v2284_v1  ;;  %v578_v31 = vmul.f32 %v3343_v13, %v2286_v2  ;;  %v579_v63 = vmul.f32 %v3346_v16, %v2286_v2  ;;  %v1280_v11 = vmin.f32 %v1248_v61, 6.0  ;;  %v2935_v55 = vld [vmem:[#allocation2 + $0x180] sm:$0xff]  ;;  %v3381_v49 = vld [vmem:[#allocation38_spill] sm:$0xff] }
  0xc9   : > { %v1281_v44 = vmin.f32 %v1249_v0, 6.0  ;;  %v994_v37 = vadd.f32 %v962_v21, %v895_v18  ;;  %v513_v41 = vadd.f32 %v481_v12, %v416_v59  ;;  %v995_v14 = vadd.f32 %v963_v29, %v896_v46  ;;  %v2941_v21 = vld [vmem:[#allocation2 + $0x181] sm:$0xff]  ;;  %v3382_v59 = vld [vmem:[#allocation39_spill] sm:$0xff]  ;;  %v3385_v12 = vld [vmem:[#allocation40_spill] sm:$0xff] }
  0xca   : > { %v514_v51 = vadd.f32 %v482_v32, %v417_v8  ;;  %v677_v36 = vmul.f32 %v3380_v39, %v2288_v3  ;;  %v678_v26 = vmul.f32 %v2775_v57, %v2288_v3  ;;  %v774_v16 = vmul.f32 %v2777_v48, %v2294_v9  ;;  %v2947_v61 = vld [vmem:[#allocation2 + $0x189] sm:$0xff] }
  0xcb   : > { %v1306_v53 = vpack.c.bf16 %v1281_v44, %v1280_v11  ;;  %v1091_v28 = vadd.f32 %v1059_v40, %v994_v37  ;;  %v610_v13 = vadd.f32 %v578_v31, %v513_v41  ;;  %v1092_v29 = vadd.f32 %v1060_v50, %v995_v14  ;;  %3383 = vst [vmem:[#allocation41_spill] sm:$0xff] %v2947_v61  ;;  %v2949_v0 = vld [vmem:[#allocation2 + $0x182] sm:$0xff]  ;;  %v2955_v32 = vld [vmem:[#allocation2 + $0x18a] sm:$0xff] }
  0xcc   : > { %v611_v22 = vadd.f32 %v579_v63, %v514_v51  ;;  %v775_v20 = vmul.f32 %v3381_v49, %v2294_v9  ;;  %v871_v8 = vmul.f32 %v3382_v59, %v2296_v10  ;;  %3384 = vst [vmem:[#allocation42_spill] sm:$0xff] %v2949_v0  ;;  %v872_v46 = vmul.f32 %v3385_v12, %v2296_v10 }
  0xcd   : > { %1422 = vmatmul.bf16.gmra.mxu1 %v1306_v53  ;;  %v1188_v40 = vadd.f32 %v1156_v56, %v1091_v28  ;;  %v709_v18 = vadd.f32 %v677_v36, %v610_v13  ;;  %v970_v50 = vmul.f32 %v2935_v55, %v2307_v17  ;;  %3386 = vst [vmem:[#allocation43_spill] sm:$0xff] %v2955_v32 }
  0xce   : > { %v1189_v31 = vadd.f32 %v1157_v19, %v1092_v29  ;;  %v710_v63 = vadd.f32 %v678_v26, %v611_v22  ;;  %v971_v11 = vmul.f32 %v2939_v33, %v2307_v17  ;;  %v1067_v44 = vmul.f32 %v2941_v21, %v2320_v24  ;;  %v1709_v29 = vld [vmem:[#allocation2 + $0x60] sm:$0xff] }
  0xcf   : > { %v1224_v37 = vadd.f32 %v2439_v35, %v1188_v40  ;;  %v806_v56 = vadd.f32 %v774_v16, %v709_v18  ;;  %v1068_v41 = vmul.f32 %v2947_v61, %v2320_v24  ;;  %v1164_v14 = vmul.f32 %v2949_v0, %v2351_v42  ;;  %v1710_v18 = vld [vmem:[#allocation2 + $0x68] sm:$0xff] }
  0xd0   : > { %v1225_v51 = vadd.f32 %v2439_v35, %v1189_v31  ;;  %v807_v36 = vadd.f32 %v775_v20, %v710_v63  ;;  %v1165_v19 = vmul.f32 %v2955_v32, %v2351_v42  ;;  %v394_v26 = vmul.f32 %v2621_v38, %v2279_v60  ;;  %v1741_v31 = vld [vmem:[#allocation2 + $0x61] sm:$0xff] }
  0xd1   : > { %v1256_v53 = vmax.f32 %v1224_v37, 0.0  ;;  %v903_v28 = vadd.f32 %v871_v8, %v806_v56  ;;  %v395_v13 = vmul.f32 %v2625_v5, %v2279_v60  ;;  %v459_v16 = vmul.f32 %v2627_v52, %v2284_v1  ;;  %v1742_v37 = vld [vmem:[#allocation2 + $0x69] sm:$0xff] }
  0xd2   : > { %v1257_v22 = vmax.f32 %v1225_v51, 0.0  ;;  %v904_v40 = vadd.f32 %v872_v46, %v807_v36  ;;  %v460_v35 = vmul.f32 %v2633_v45, %v2284_v1  ;;  %v556_v20 = vmul.f32 %v2635_v4, %v2286_v2  ;;  %v1773_v51 = vld [vmem:[#allocation2 + $0x62] sm:$0xff]  ;;  %v1774_v36 = vld [vmem:[#allocation2 + $0x6a] sm:$0xff] }
  0xd3   : > { %v1288_v38 = vmin.f32 %v1256_v53, 6.0  ;;  %v1002_v63 = vadd.f32 %v970_v50, %v903_v28  ;;  %v491_v8 = vadd.f32 %v459_v16, %v394_v26  ;;  %v557_v5 = vmul.f32 %v2641_v27, %v2286_v2  ;;  %v1805_v53 = vld [vmem:[#allocation2 + $0x78] sm:$0xff]  ;;  %v1806_v50 = vld [vmem:[#allocation2 + $0x80] sm:$0xff] }
  0xd4   : > { %v1289_v56 = vmin.f32 %v1257_v22, 6.0  ;;  %v1003_v52 = vadd.f32 %v971_v11, %v904_v40  ;;  %v492_v32 = vadd.f32 %v460_v35, %v395_v13  ;;  %v655_v46 = vmul.f32 %v1709_v29, %v2288_v3  ;;  %v1837_v22 = vld [vmem:[#allocation2 + $0x79] sm:$0xff]  ;;  %v1838_v11 = vld [vmem:[#allocation2 + $0x81] sm:$0xff] }
  0xd5   : > { %v1099_v45 = vadd.f32 %v1067_v44, %v1002_v63  ;;  %v588_v0 = vadd.f32 %v556_v20, %v491_v8  ;;  %v656_v4 = vmul.f32 %v1710_v18, %v2288_v3  ;;  %v752_v61 = vmul.f32 %v1741_v31, %v2294_v9  ;;  %v1869_v35 = vld [vmem:[#allocation2 + $0x7a] sm:$0xff]  ;;  %v1870_v20 = vld [vmem:[#allocation2 + $0x82] sm:$0xff] }
  0xd6   : > { %v1310_v26 = vpack.c.bf16 %v1289_v56, %v1288_v38  ;;  %v1100_v28 = vadd.f32 %v1068_v41, %v1003_v52  ;;  %v589_v16 = vadd.f32 %v557_v5, %v492_v32  ;;  %v753_v27 = vmul.f32 %v1742_v37, %v2294_v9  ;;  %v2992_v32 = vld [vmem:[%s3196_s2] ss:$0 sm:$0xff] }
  0xd7   : > { %v1196_v13 = vadd.f32 %v1164_v14, %v1099_v45  ;;  %v687_v40 = vadd.f32 %v655_v46, %v588_v0  ;;  %v849_v29 = vmul.f32 %v1773_v51, %v2296_v10  ;;  %v850_v44 = vmul.f32 %v1774_v36, %v2296_v10 }
  0xd8   : > { %1442 = vmatmul.bf16.gmra.mxu2 %v1310_v26  ;;  %v1197_v18 = vadd.f32 %v1165_v19, %v1100_v28  ;;  %v688_v31 = vadd.f32 %v656_v4, %v589_v16  ;;  %v948_v63 = vmul.f32 %v1805_v53, %v2307_v17  ;;  %v949_v41 = vmul.f32 %v1806_v50, %v2307_v17  ;;  %v1717_v50 = vld [vmem:[#allocation2 + $0xc0] sm:$0xff]  ;;  %v1718_v26 = vld [vmem:[#allocation2 + $0xc8] sm:$0xff] }
  0xd9   : > { %v1232_v0 = vadd.f32 %v2992_v32, %v1196_v13  ;;  %v784_v14 = vadd.f32 %v752_v61, %v687_v40  ;;  %v1045_v38 = vmul.f32 %v1837_v22, %v2320_v24  ;;  %v1046_v8 = vmul.f32 %v1838_v11, %v2320_v24  ;;  %v1749_v28 = vld [vmem:[#allocation2 + $0xc1] sm:$0xff] }
  0xda   : > { %v1233_v5 = vadd.f32 %v2992_v32, %v1197_v18  ;;  %v785_v19 = vadd.f32 %v753_v27, %v688_v31  ;;  %v1142_v37 = vmul.f32 %v1869_v35, %v2351_v42  ;;  %v1143_v56 = vmul.f32 %v1870_v20, %v2351_v42  ;;  %v1813_v31 = vld [vmem:[#allocation2 + $0xd8] sm:$0xff] }
  0xdb   : > { %v1264_v52 = vmax.f32 %v1232_v0, 0.0  ;;  %v881_v46 = vadd.f32 %v849_v29, %v784_v14  ;;  %v402_v51 = vmul.f32 %v2671_v43, %v2279_v60  ;;  %v403_v36 = vmul.f32 %v2677_v6, %v2279_v60  ;;  %v1750_v29 = vld [vmem:[#allocation2 + $0xc9] sm:$0xff] }
  0xdc   : > { %v1265_v61 = vmax.f32 %v1233_v5, 0.0  ;;  %v882_v45 = vadd.f32 %v850_v44, %v785_v19  ;;  %v467_v4 = vmul.f32 %v2679_v15, %v2284_v1  ;;  %v468_v53 = vmul.f32 %v3354_v62, %v2284_v1  ;;  %v1781_v15 = vld [vmem:[#allocation2 + $0xc2] sm:$0xff]  ;;  %v1782_v44 = vld [vmem:[#allocation2 + $0xca] sm:$0xff]  ;;  %v1845_v5 = vld [vmem:[#allocation2 + $0xd9] sm:$0xff] }
  0xdd   : > { %v1296_v16 = vmin.f32 %v1264_v52, 6.0  ;;  %v980_v27 = vadd.f32 %v948_v63, %v881_v46  ;;  %v564_v22 = vmul.f32 %v3355_v58, %v2286_v2  ;;  %v565_v43 = vmul.f32 %v3356_v23, %v2286_v2  ;;  %v1814_v23 = vld [vmem:[#allocation2 + $0xe0] sm:$0xff] }
  0xde   : > { %v1297_v6 = vmin.f32 %v1265_v61, 6.0  ;;  %v981_v11 = vadd.f32 %v949_v41, %v882_v45  ;;  %v499_v13 = vadd.f32 %v467_v4, %v402_v51  ;;  %v500_v40 = vadd.f32 %v468_v53, %v403_v36  ;;  %v1846_v41 = vld [vmem:[#allocation2 + $0xe1] sm:$0xff] }
  0xdf   : > { %v1077_v35 = vadd.f32 %v1045_v38, %v980_v27  ;;  %v663_v62 = vmul.f32 %v1717_v50, %v2288_v3  ;;  %v664_v20 = vmul.f32 %v1718_v26, %v2288_v3  ;;  %v760_v18 = vmul.f32 %v1749_v28, %v2294_v9  ;;  %v1877_v51 = vld [vmem:[#allocation2 + $0xda] sm:$0xff] }
  0xe0   : > { %v1314_v63 = vpack.c.bf16 %v1297_v6, %v1296_v16  ;;  %v1078_v58 = vadd.f32 %v1046_v8, %v981_v11  ;;  %v596_v0 = vadd.f32 %v564_v22, %v499_v13  ;;  %v597_v14 = vadd.f32 %v565_v43, %v500_v40  ;;  %v1878_v8 = vld [vmem:[#allocation2 + $0xe2] sm:$0xff] }
  0xe1   : > { %v1174_v19 = vadd.f32 %v1142_v37, %v1077_v35  ;;  %v761_v52 = vmul.f32 %v1750_v29, %v2294_v9  ;;  %v857_v46 = vmul.f32 %v1781_v15, %v2296_v10  ;;  %v858_v38 = vmul.f32 %v1782_v44, %v2296_v10  ;;  %v1725_v44 = vld [vmem:[#allocation2 + $0x120] sm:$0xff]  ;;  %v1726_v35 = vld [vmem:[#allocation2 + $0x128] sm:$0xff] }
  0xe2   : > { %1462 = vmatmul.bf16.gmra.mxu3 %v1314_v63  ;;  %v1175_v36 = vadd.f32 %v1143_v56, %v1078_v58  ;;  %v695_v61 = vadd.f32 %v663_v62, %v596_v0  ;;  %v696_v45 = vadd.f32 %v664_v20, %v597_v14  ;;  %v956_v4 = vmul.f32 %v1813_v31, %v2307_v17  ;;  %v1757_v62 = vld [vmem:[#allocation2 + $0x121] sm:$0xff]  ;;  %v1758_v14 = vld [vmem:[#allocation2 + $0x129] sm:$0xff] }
  0xe3   : > { %v1210_v53 = vadd.f32 %v2992_v32, %v1174_v19  ;;  %v957_v50 = vmul.f32 %v1814_v23, %v2307_v17  ;;  %v1053_v37 = vmul.f32 %v1845_v5, %v2320_v24  ;;  %v1054_v26 = vmul.f32 %v1846_v41, %v2320_v24  ;;  %v1789_v23 = vld [vmem:[#allocation2 + $0x122] sm:$0xff] }
  0xe4   : > { %v1211_v28 = vadd.f32 %v2992_v32, %v1175_v36  ;;  %v792_v16 = vadd.f32 %v760_v18, %v695_v61  ;;  %v793_v27 = vadd.f32 %v761_v52, %v696_v45  ;;  %v1150_v22 = vmul.f32 %v1877_v51, %v2351_v42  ;;  %v1821_v52 = vld [vmem:[#allocation2 + $0x138] sm:$0xff]  ;;  %v1854_v61 = vld [vmem:[#allocation2 + $0x141] sm:$0xff] }
  0xe5   : > { %v1242_v56 = vmax.f32 %v1210_v53, 0.0  ;;  %v1151_v43 = vmul.f32 %v1878_v8, %v2351_v42  ;;  %v410_v6 = vmul.f32 %v3368_v7, %v2279_v60  ;;  %v411_v11 = vmul.f32 %v3369_v25, %v2279_v60  ;;  %v1853_v36 = vld [vmem:[#allocation2 + $0x139] sm:$0xff] }
  0xe6   : > { %v1243_v13 = vmax.f32 %v1211_v28, 0.0  ;;  %v889_v40 = vadd.f32 %v857_v46, %v792_v16  ;;  %v890_v29 = vadd.f32 %v858_v38, %v793_v27  ;;  %v475_v15 = vmul.f32 %v3370_v30, %v2284_v1  ;;  %v1790_v30 = vld [vmem:[#allocation2 + $0x12a] sm:$0xff] }
  0xe7   : > { %v1274_v20 = vmin.f32 %v1242_v56, 6.0  ;;  %v476_v18 = vmul.f32 %v3371_v47, %v2284_v1  ;;  %v572_v31 = vmul.f32 %v3372_v54, %v2286_v2  ;;  %v573_v7 = vmul.f32 %v3373_v34, %v2286_v2  ;;  %v1822_v34 = vld [vmem:[#allocation2 + $0x140] sm:$0xff] }
  0xe8   : > { %v1275_v25 = vmin.f32 %v1243_v13, 6.0  ;;  %v988_v63 = vadd.f32 %v956_v4, %v889_v40  ;;  %v989_v58 = vadd.f32 %v957_v50, %v890_v29  ;;  %v507_v0 = vadd.f32 %v475_v15, %v410_v6  ;;  %v1885_v50 = vld [vmem:[#allocation2 + $0x13a] sm:$0xff] }
  0xe9   : > { %v508_v5 = vadd.f32 %v476_v18, %v411_v11  ;;  %v671_v41 = vmul.f32 %v1725_v44, %v2288_v3  ;;  %v672_v19 = vmul.f32 %v1726_v35, %v2288_v3  ;;  %v768_v47 = vmul.f32 %v1757_v62, %v2294_v9 }
  0xea   : > { %v1303_v46 = vpack.c.bf16 %v1275_v25, %v1274_v20  ;;  %v1085_v54 = vadd.f32 %v1053_v37, %v988_v63  ;;  %v1086_v38 = vadd.f32 %v1054_v26, %v989_v58  ;;  %v604_v51 = vadd.f32 %v572_v31, %v507_v0  ;;  %v1886_v37 = vld [vmem:[#allocation2 + $0x142] sm:$0xff] }
  0xeb   : > { %v605_v45 = vadd.f32 %v573_v7, %v508_v5  ;;  %v769_v4 = vmul.f32 %v1758_v14, %v2294_v9  ;;  %v865_v8 = vmul.f32 %v1789_v23, %v2296_v10  ;;  %v866_v53 = vmul.f32 %v1790_v30, %v2296_v10 }
  0xec   : > { %1407 = vmatmul.bf16.gmra.mxu0 %v1303_v46  ;;  %v1182_v28 = vadd.f32 %v1150_v22, %v1085_v54  ;;  %v1183_v16 = vadd.f32 %v1151_v43, %v1086_v38  ;;  %v703_v27 = vadd.f32 %v671_v41, %v604_v51  ;;  %v964_v56 = vmul.f32 %v1821_v52, %v2307_v17  ;;  %v1829_v46 = vld [vmem:[#allocation2 + $0x198] sm:$0xff]  ;;  %v1830_v54 = vld [vmem:[#allocation2 + $0x1a0] sm:$0xff]  ;;  %v3388_v38 = vld [vmem:[#allocation42_spill] sm:$0xff] }
  0xed   : > { %v704_v26 = vadd.f32 %v672_v19, %v605_v45  ;;  %v965_v6 = vmul.f32 %v1822_v34, %v2307_v17  ;;  %v1061_v11 = vmul.f32 %v1853_v36, %v2320_v24  ;;  %v1062_v13 = vmul.f32 %v1854_v61, %v2320_v24  ;;  %v1861_v34 = vld [vmem:[#allocation2 + $0x199] sm:$0xff]  ;;  %v3389_v45 = vld [vmem:[#allocation43_spill] sm:$0xff] }
  0xee   : > { %v1218_v40 = vadd.f32 %v2992_v32, %v1182_v28  ;;  %v1219_v29 = vadd.f32 %v2992_v32, %v1183_v16  ;;  %v800_v15 = vadd.f32 %v768_v47, %v703_v27  ;;  %v1158_v44 = vmul.f32 %v1885_v50, %v2351_v42  ;;  %v3387_v47 = vld [vmem:[#allocation41_spill] sm:$0xff] }
  0xef   : > { %v801_v22 = vadd.f32 %v769_v4, %v704_v26  ;;  %v1159_v43 = vmul.f32 %v1886_v37, %v2351_v42  ;;  %v418_v35 = vmul.f32 %v3380_v39, %v2279_v60  ;;  %v419_v62 = vmul.f32 %v2775_v57, %v2279_v60  ;;  %v1393_v39 = vpop.f32.mrf.mxu0  ;;  %v1862_v4 = vld [vmem:[#allocation2 + $0x1a1] sm:$0xff] }
  0xf0   : > { %v1250_v20 = vmax.f32 %v1218_v40, 0.0  ;;  %v1251_v18 = vmax.f32 %v1219_v29, 0.0  ;;  %v897_v31 = vadd.f32 %v865_v8, %v800_v15  ;;  %v483_v7 = vmul.f32 %v2777_v48, %v2284_v1  ;;  %v1893_v16 = vld [vmem:[#allocation2 + $0x19a] sm:$0xff] }
  0xf1   : > { %v898_v25 = vadd.f32 %v866_v53, %v801_v22  ;;  %v484_v63 = vmul.f32 %v3381_v49, %v2284_v1  ;;  %v580_v58 = vmul.f32 %v3382_v59, %v2286_v2  ;;  %v581_v0 = vmul.f32 %v3385_v12, %v2286_v2 }
  0xf2   : > { %v1282_v14 = vmin.f32 %v1250_v20, 6.0  ;;  %v1283_v23 = vmin.f32 %v1251_v18, 6.0  ;;  %v996_v60 = vadd.f32 %v964_v56, %v897_v31  ;;  %v515_v57 = vadd.f32 %v483_v7, %v418_v35 }
  0xf3   : > { %v997_v30 = vadd.f32 %v965_v6, %v898_v25  ;;  %v516_v5 = vadd.f32 %v484_v63, %v419_v62  ;;  %v679_v48 = vmul.f32 %v2935_v55, %v2288_v3  ;;  %v680_v41 = vmul.f32 %v2939_v33, %v2288_v3  ;;  %v3075_v55 = vld [vmem:[%s3198_s4] ss:$0 sm:$0xff] }
  0xf4   : > { %v1307_v1 = vpack.c.bf16 %v1283_v23, %v1282_v14  ;;  %v1093_v49 = vadd.f32 %v1061_v11, %v996_v60  ;;  %v612_v19 = vadd.f32 %v580_v58, %v515_v57  ;;  %v776_v59 = vmul.f32 %v2941_v21, %v2294_v9 }
  0xf5   : > { %v1094_v2 = vadd.f32 %v1062_v13, %v997_v30  ;;  %v613_v12 = vadd.f32 %v581_v0, %v516_v5  ;;  %v777_v52 = vmul.f32 %v3387_v47, %v2294_v9  ;;  %v873_v51 = vmul.f32 %v3388_v38, %v2296_v10  ;;  %v1413_v21 = vpop.f32.mrf.mxu1  ;;  %v1894_v13 = vld [vmem:[#allocation2 + $0x1a2] sm:$0xff] }
  0xf6   : > { %1427 = vmatmul.bf16.gmra.mxu1 %v1307_v1  ;;  %v1190_v3 = vadd.f32 %v1158_v44, %v1093_v49  ;;  %v711_v33 = vadd.f32 %v679_v48, %v612_v19  ;;  %v874_v9 = vmul.f32 %v3389_v45, %v2296_v10  ;;  %v972_v50 = vmul.f32 %v1829_v46, %v2307_v17 }
  0xf7   : > { %v1191_v36 = vadd.f32 %v1159_v43, %v1094_v2  ;;  %v712_v61 = vadd.f32 %v680_v41, %v613_v12  ;;  %v973_v28 = vmul.f32 %v1830_v54, %v2307_v17  ;;  %v1069_v37 = vmul.f32 %v1861_v34, %v2320_v24  ;;  %v1395_v22 = vpop.f32.mrf.mxu0 }
  0xf8   : > { %v1226_v8 = vadd.f32 %v2992_v32, %v1190_v3  ;;  %v808_v53 = vadd.f32 %v776_v59, %v711_v33  ;;  %v1394_v26 = vadd.f32 %v3075_v55, %v1393_v39  ;;  %v1070_v10 = vmul.f32 %v1862_v4, %v2320_v24 }
  0xf9   : > { %v1227_v27 = vadd.f32 %v2992_v32, %v1191_v36  ;;  %v809_v56 = vadd.f32 %v777_v52, %v712_v61  ;;  %v1414_v40 = vadd.f32 %v3075_v55, %v1413_v21  ;;  %v1166_v44 = vmul.f32 %v1893_v16, %v2351_v42 }
  0xfa   : > { %v1258_v6 = vmax.f32 %v1226_v8, 0.0  ;;  %v905_v11 = vadd.f32 %v873_v51, %v808_v53  ;;  %v1473_v17 = vmax.f32 %v1394_v26, 0.0  ;;  %v1396_v20 = vadd.f32 %v3075_v55, %v1395_v22 }
  0xfb   : > { %v1259_v29 = vmax.f32 %v1227_v27, 0.0  ;;  %v906_v15 = vadd.f32 %v874_v9, %v809_v56  ;;  %v1481_v62 = vmax.f32 %v1414_v40, 0.0  ;;  %v1167_v24 = vmul.f32 %v1894_v13, %v2351_v42 }
  0xfc   : > { %v1290_v43 = vmin.f32 %v1258_v6, 6.0  ;;  %v1004_v35 = vadd.f32 %v972_v50, %v905_v11  ;;  %v1505_v7 = vmin.f32 %v1473_v17, 6.0  ;;  %v1474_v58 = vmax.f32 %v1396_v20, 0.0 }
  0xfd   : > { %v1291_v18 = vmin.f32 %v1259_v29, 6.0  ;;  %v1005_v31 = vadd.f32 %v973_v28, %v906_v15  ;;  %v1513_v63 = vmin.f32 %v1481_v62, 6.0  ;;  %v1415_v0 = vpop.f32.mrf.mxu1 }
  0xfe   : > { %v1101_v25 = vadd.f32 %v1069_v37, %v1004_v35  ;;  %1537 = vst [vmem:[%s2262_s13] sm:$0xff] %v1505_v7  ;;  %v1416_v23 = vadd.f32 %v3075_v55, %v1415_v0  ;;  %v1506_v57 = vmin.f32 %v1474_v58, 6.0 }
  0xff   : > { %v1311_v39 = vpack.c.bf16 %v1291_v18, %v1290_v43  ;;  %v1102_v14 = vadd.f32 %v1070_v10, %v1005_v31  ;;  %1545 = vst [vmem:[%s2262_s13 + $0x40] sm:$0xff] %v1513_v63 }
 0x100   : > { %v1198_v60 = vadd.f32 %v1166_v44, %v1101_v25  ;;  %v1482_v5 = vmax.f32 %v1416_v23, 0.0  ;;  %1538 = vst [vmem:[%s2262_s13 + $0x8] sm:$0xff] %v1506_v57 }
 0x101   : > { %1447 = vmatmul.bf16.gmra.mxu2 %v1311_v39  ;;  %v1199_v30 = vadd.f32 %v1167_v24, %v1102_v14 }
 0x102   : > { %v1234_v42 = vadd.f32 %v2992_v32, %v1198_v60  ;;  %v1514_v41 = vmin.f32 %v1482_v5, 6.0 }
 0x103   : > { %v1235_v48 = vadd.f32 %v2992_v32, %v1199_v30 }
 0x104   : > { %v1266_v1 = vmax.f32 %v1234_v42, 0.0  ;;  %1546 = vst [vmem:[%s2262_s13 + $0x48] sm:$0xff] %v1514_v41 }
 0x105   : > { %v1267_v49 = vmax.f32 %v1235_v48, 0.0 }
 0x106   : > { %v1298_v19 = vmin.f32 %v1266_v1, 6.0 }
 0x107   : > { %v1299_v59 = vmin.f32 %v1267_v49, 6.0  ;;  %v1433_v2 = vpop.f32.mrf.mxu2 }
 0x108   : > { %v1434_v47 = vadd.f32 %v3075_v55, %v1433_v2 }
 0x109   : > { %v1315_v12 = vpack.c.bf16 %v1299_v59, %v1298_v19 }
 0x10a   : > { %v1489_v52 = vmax.f32 %v1434_v47, 0.0 }
 0x10b   : > { %1467 = vmatmul.bf16.gmra.mxu3 %v1315_v12 }
 0x10c   : > { %v1521_v46 = vmin.f32 %v1489_v52, 6.0 }
 0x10e   : > { %1553 = vst [vmem:[%s2262_s13 + $0x80] sm:$0xff] %v1521_v46 }
 0x10f   : > { %v1435_v54 = vpop.f32.mrf.mxu2 }
 0x110   : > { %v1436_v32 = vadd.f32 %v3075_v55, %v1435_v54 }
 0x112   : > { %v1490_v3 = vmax.f32 %v1436_v32, 0.0 }
 0x114   : > { %v1522_v51 = vmin.f32 %v1490_v3, 6.0 }
 0x115   : > { %v1453_v33 = vpop.f32.mrf.mxu3 }
 0x116   : > { %v1454_v38 = vadd.f32 %v3075_v55, %v1453_v33  ;;  %1554 = vst [vmem:[%s2262_s13 + $0x88] sm:$0xff] %v1522_v51  ;;  %v1398_v21 = vpop.f32.mrf.mxu0 }
 0x117   : > { %v1399_v36 = vadd.f32 %v3075_v55, %v1398_v21 }
 0x118   : > { %v1497_v34 = vmax.f32 %v1454_v38, 0.0 }
 0x119   : > { %v1475_v45 = vmax.f32 %v1399_v36, 0.0 }
 0x11a   : > { %v1529_v61 = vmin.f32 %v1497_v34, 6.0 }
 0x11b   : > { %v1507_v4 = vmin.f32 %v1475_v45, 6.0 }
 0x11c   : > { %1561 = vst [vmem:[%s2262_s13 + $0xc0] sm:$0xff] %v1529_v61 }
 0x11d   : > { %v1455_v9 = vpop.f32.mrf.mxu3  ;;  %1539 = vst [vmem:[%s2262_s13 + $0x10] sm:$0xff] %v1507_v4 }
 0x11e   : > { %v1456_v8 = vadd.f32 %v3075_v55, %v1455_v9  ;;  %v1400_v27 = vpop.f32.mrf.mxu0 }
 0x11f   : > { %v1401_v37 = vadd.f32 %v3075_v55, %v1400_v27 }
 0x120   : > { %v1498_v53 = vmax.f32 %v1456_v8, 0.0  ;;  %v1418_v28 = vpop.f32.mrf.mxu1 }
 0x121   : > { %v1419_v16 = vadd.f32 %v3075_v55, %v1418_v28  ;;  %v1476_v6 = vmax.f32 %v1401_v37, 0.0 }
 0x122   : > { %v1530_v50 = vmin.f32 %v1498_v53, 6.0 }
 0x123   : > { %v1483_v56 = vmax.f32 %v1419_v16, 0.0  ;;  %v1508_v11 = vmin.f32 %v1476_v6, 6.0 }
 0x124   : > { %1562 = vst [vmem:[%s2262_s13 + $0xc8] sm:$0xff] %v1530_v50 }
 0x125   : > { %v1515_v26 = vmin.f32 %v1483_v56, 6.0  ;;  %1540 = vst [vmem:[%s2262_s13 + $0x18] sm:$0xff] %v1508_v11 }
 0x127   : > { %1547 = vst [vmem:[%s2262_s13 + $0x50] sm:$0xff] %v1515_v26 }
 0x128   : > { %v1420_v10 = vpop.f32.mrf.mxu1 }
 0x129   : > { %v1421_v13 = vadd.f32 %v3075_v55, %v1420_v10 }
 0x12b   : > { %v1484_v40 = vmax.f32 %v1421_v13, 0.0 }
 0x12d   : > { %v1516_v29 = vmin.f32 %v1484_v40, 6.0 }
 0x12f   : > { %1548 = vst [vmem:[%s2262_s13 + $0x58] sm:$0xff] %v1516_v29 }
 0x131   : > { %v1438_v15 = vpop.f32.mrf.mxu2 }
 0x132   : > { %v1439_v44 = vadd.f32 %v3075_v55, %v1438_v15 }
 0x134   : > { %v1491_v17 = vmax.f32 %v1439_v44, 0.0 }
 0x136   : > { %v1523_v22 = vmin.f32 %v1491_v17, 6.0 }
 0x138   : > { %1555 = vst [vmem:[%s2262_s13 + $0x90] sm:$0xff] %v1523_v22 }
 0x139   : > { %v1440_v43 = vpop.f32.mrf.mxu2 }
 0x13a   : > { %v1441_v35 = vadd.f32 %v3075_v55, %v1440_v43 }
 0x13c   : > { %v1458_v62 = vpop.f32.mrf.mxu3  ;;  %v1492_v18 = vmax.f32 %v1441_v35, 0.0 }
 0x13d   : > { %v1459_v20 = vadd.f32 %v3075_v55, %v1458_v62 }
 0x13e   : > { %v1524_v24 = vmin.f32 %v1492_v18, 6.0 }
 0x13f   : > { %v1499_v31 = vmax.f32 %v1459_v20, 0.0 }
 0x140   : > { %v1403_v7 = vpop.f32.mrf.mxu0  ;;  %1556 = vst [vmem:[%s2262_s13 + $0x98] sm:$0xff] %v1524_v24 }
 0x141   : > { %v1531_v25 = vmin.f32 %v1499_v31, 6.0  ;;  %v1404_v63 = vadd.f32 %v3075_v55, %v1403_v7 }
 0x143   : > { %1563 = vst [vmem:[%s2262_s13 + $0xd0] sm:$0xff] %v1531_v25  ;;  %v1477_v58 = vmax.f32 %v1404_v63, 0.0 }
 0x144   : > { %v1460_v0 = vpop.f32.mrf.mxu3 }
 0x145   : > { %v1461_v39 = vadd.f32 %v3075_v55, %v1460_v0  ;;  %v1509_v14 = vmin.f32 %v1477_v58, 6.0 }
 0x147   : > { %v1500_v23 = vmax.f32 %v1461_v39, 0.0  ;;  %1541 = vst [vmem:[%s2262_s13 + $0x20] sm:$0xff] %v1509_v14 }
 0x148   : > { %v1405_v5 = vpop.f32.mrf.mxu0 }
 0x149   : > { %v1532_v60 = vmin.f32 %v1500_v23, 6.0  ;;  %v1406_v48 = vadd.f32 %v3075_v55, %v1405_v5 }
 0x14a   : > { %v1423_v57 = vpop.f32.mrf.mxu1 }
 0x14b   : > { %1564 = vst [vmem:[%s2262_s13 + $0xd8] sm:$0xff] %v1532_v60  ;;  %v1424_v30 = vadd.f32 %v3075_v55, %v1423_v57  ;;  %v1478_v1 = vmax.f32 %v1406_v48, 0.0 }
 0x14d   : > { %v1485_v42 = vmax.f32 %v1424_v30, 0.0  ;;  %v1510_v49 = vmin.f32 %v1478_v1, 6.0 }
 0x14f   : > { %v1517_v41 = vmin.f32 %v1485_v42, 6.0  ;;  %1542 = vst [vmem:[%s2262_s13 + $0x28] sm:$0xff] %v1510_v49 }
 0x151   : > { %1549 = vst [vmem:[%s2262_s13 + $0x60] sm:$0xff] %v1517_v41 }
 0x152   : > { %v1425_v19 = vpop.f32.mrf.mxu1 }
 0x153   : > { %v1426_v59 = vadd.f32 %v3075_v55, %v1425_v19 }
 0x155   : > { %v1486_v2 = vmax.f32 %v1426_v59, 0.0 }
 0x157   : > { %v1518_v12 = vmin.f32 %v1486_v2, 6.0 }
 0x159   : > { %1550 = vst [vmem:[%s2262_s13 + $0x68] sm:$0xff] %v1518_v12 }
 0x15b   : > { %v1443_v47 = vpop.f32.mrf.mxu2 }
 0x15c   : > { %v1444_v52 = vadd.f32 %v3075_v55, %v1443_v47 }
 0x15e   : > { %v1493_v46 = vmax.f32 %v1444_v52, 0.0 }
 0x160   : > { %v1525_v54 = vmin.f32 %v1493_v46, 6.0 }
 0x162   : > { %1557 = vst [vmem:[%s2262_s13 + $0xa0] sm:$0xff] %v1525_v54 }
 0x163   : > { %v1445_v32 = vpop.f32.mrf.mxu2 }
 0x164   : > { %v1446_v3 = vadd.f32 %v3075_v55, %v1445_v32 }
 0x165   : > { %v1463_v33 = vpop.f32.mrf.mxu3 }
 0x166   : > { %v1464_v38 = vadd.f32 %v3075_v55, %v1463_v33  ;;  %v1494_v51 = vmax.f32 %v1446_v3, 0.0 }
 0x168   : > { %v1501_v34 = vmax.f32 %v1464_v38, 0.0  ;;  %v1526_v21 = vmin.f32 %v1494_v51, 6.0 }
 0x169   : > { %v1408_v36 = vpop.f32.mrf.mxu0 }
 0x16a   : > { %v1533_v61 = vmin.f32 %v1501_v34, 6.0  ;;  %1558 = vst [vmem:[%s2262_s13 + $0xa8] sm:$0xff] %v1526_v21  ;;  %v1409_v45 = vadd.f32 %v3075_v55, %v1408_v36 }
 0x16c   : > { %1565 = vst [vmem:[%s2262_s13 + $0xe0] sm:$0xff] %v1533_v61  ;;  %v1479_v9 = vmax.f32 %v1409_v45, 0.0 }
 0x16d   : > { %v1465_v4 = vpop.f32.mrf.mxu3 }
 0x16e   : > { %v1466_v8 = vadd.f32 %v3075_v55, %v1465_v4  ;;  %v1511_v53 = vmin.f32 %v1479_v9, 6.0 }
 0x170   : > { %v1502_v50 = vmax.f32 %v1466_v8, 0.0  ;;  %1543 = vst [vmem:[%s2262_s13 + $0x30] sm:$0xff] %v1511_v53 }
 0x171   : > { %v1410_v28 = vpop.f32.mrf.mxu0 }
 0x172   : > { %v1534_v16 = vmin.f32 %v1502_v50, 6.0  ;;  %v1411_v27 = vadd.f32 %v3075_v55, %v1410_v28 }
 0x173   : > { %v1428_v56 = vpop.f32.mrf.mxu1 }
 0x174   : > { %1566 = vst [vmem:[%s2262_s13 + $0xe8] sm:$0xff] %v1534_v16  ;;  %v1429_v37 = vadd.f32 %v3075_v55, %v1428_v56  ;;  %v1480_v26 = vmax.f32 %v1411_v27, 0.0 }
 0x176   : > { %v1487_v6 = vmax.f32 %v1429_v37, 0.0  ;;  %v1512_v11 = vmin.f32 %v1480_v26, 6.0 }
 0x178   : > { %v1519_v10 = vmin.f32 %v1487_v6, 6.0  ;;  %1544 = vst [vmem:[%s2262_s13 + $0x38] sm:$0xff] %v1512_v11 }
 0x17a   : > { %1551 = vst [vmem:[%s2262_s13 + $0x70] sm:$0xff] %v1519_v10 }
 0x17b   : > { %v1430_v13 = vpop.f32.mrf.mxu1 }
 0x17c   : > { %v1431_v40 = vadd.f32 %v3075_v55, %v1430_v13 }
 0x17e   : > { %v1488_v29 = vmax.f32 %v1431_v40, 0.0 }
 0x180   : > { %v1520_v15 = vmin.f32 %v1488_v29, 6.0 }
 0x182   : > { %1552 = vst [vmem:[%s2262_s13 + $0x78] sm:$0xff] %v1520_v15 }
 0x184   : > { %v1448_v44 = vpop.f32.mrf.mxu2 }
 0x185   : > { %v1449_v17 = vadd.f32 %v3075_v55, %v1448_v44 }
 0x187   : > { %v1495_v22 = vmax.f32 %v1449_v17, 0.0 }
 0x189   : > { %v1527_v43 = vmin.f32 %v1495_v22, 6.0 }
 0x18b   : > { %1559 = vst [vmem:[%s2262_s13 + $0xb0] sm:$0xff] %v1527_v43 }
 0x18c   : > { %v1450_v35 = vpop.f32.mrf.mxu2 }
 0x18d   : > { %v1451_v62 = vadd.f32 %v3075_v55, %v1450_v35 }
 0x18e   : > { %v1468_v20 = vpop.f32.mrf.mxu3 }
 0x18f   : > { %v1469_v18 = vadd.f32 %v3075_v55, %v1468_v20  ;;  %v1496_v31 = vmax.f32 %v1451_v62, 0.0 }
 0x191   : > { %v1503_v24 = vmax.f32 %v1469_v18, 0.0  ;;  %v1528_v7 = vmin.f32 %v1496_v31, 6.0 }
 0x193   : > { %v1535_v25 = vmin.f32 %v1503_v24, 6.0  ;;  %1560 = vst [vmem:[%s2262_s13 + $0xb8] sm:$0xff] %v1528_v7 }
 0x195   : > { %1567 = vst [vmem:[%s2262_s13 + $0xf0] sm:$0xff] %v1535_v25 }
 0x196   : > { %v1470_v63 = vpop.f32.mrf.mxu3 }
 0x197   : > { %v1471_v58 = vadd.f32 %v3075_v55, %v1470_v63 }
 0x199   : > { %v1504_v0 = vmax.f32 %v1471_v58, 0.0 }
 0x19b   : > { %v1536_v39 = vmin.f32 %v1504_v0, 6.0 }
 0x19d   : > { %1568 = vst [vmem:[%s2262_s13 + $0xf8] sm:$0xff] %v1536_v39 }
 0x19e   : > { %2054 = shalt.err (!%p2051_p3)
}
 0x19f   : > { %s2109_s7 = smov 128   ;;  %s2110_s13 = smov 8  }
 0x1a0   : > { %1967 = dma.vmem_to_hbm [thread:$0]  (%p2181_p4), %s1585_s27, 4096, %s1587_s29, %s1570_s21, %s2109_s7, %s2109_s7, %s2110_s13  }
 0x1a1 PF: > { %p1973_p5 = scmp.ge.s32.totalorder %s2107_s23, 2  ;;  %s1601_s16 = sand.u32 1, %s2087_s18  }
 0x1a2   : > { %s1602_s17 = scalar_lea.sflag [#allocation5], %s1601_s16 }
 0x1a3   : > { %p1970_p6 = pnand %p1973_p5, %p2188_p8 }
 0x1a5   : > { %p1971_p7 = pneg %p1970_p6 }
 0x1a7   : > { %2082 = dma.done.wait (%p1971_p7), %s1602_s17, 4096  }
 0x1a8   : > { %2084 = vsyncadd (%p1971_p7), %s1602_s17, 4294963200  ;;  %s18_s23 = sadd.s32 1, %s2107_s23   ;;  %s3390_s18 = smov %s2091_s19 }
 0x1a9   : > { %p15_p9 = scmp.ge.s32.totalorder %s18_s23, 4   ;;  %s3391_s19 = smov %s2095_s20 }
 0x1aa   : > { %s3392_s20 = smov %s2194_s6  ;;  %s3393_s21 = smov %s2103_s22 }
 0x1ab   : > { %s3394_s22 = smov %s3396_s26  ;;  %17 = sbr.rel (!%p15_p9) target bundleno = 4 (0x4), region = 110 }
 0x1b0   :  { %1608 = vsyncpa [#allocation5], 1 }
 0x1b1   :  { %1610 = vsyncpa [#allocation5 + $0x1], 1 }
 0x1b2   :  { %1611 = vsyncmov [#allocation3] }
 0x1b5   :  { %s1612_s28 = vpop.sfrf %1611 }
 0x1b6   :  { %p1932_p4 = scmp.ne.s32.totalorder %s1612_s28, 0 }
 0x1b8   :  { %1616 = shalt.err (%p1932_p4)  }
 0x1b9   :  { %1618 = vsyncmov [#allocation3 + $0x1] }
 0x1bc   :  { %s1619_s30 = vpop.sfrf %1618 }
 0x1bd   :  { %p1933_p8 = scmp.ne.s32.totalorder %s1619_s30, 0 }
 0x1bf   :  { %1623 = shalt.err (%p1933_p8)  }

</bundles_post_ra>
